<compile_context>
chip_gen: v7x
topology: tpu7x:2x2x1
jax: 0.10.0
libtpu: 0.0.40
codegen_flags: <defaults>
</compile_context>

<pallas_src>
import math
import functools

import jax
import jax.numpy as jnp
from jax.experimental import pallas as pl
from jax.experimental.pallas import tpu as pltpu

EPS_LN = 1e-10                      # custom LayerNorm eps in the reference module
VMEM_LIMIT = 32 * 1024 * 1024       # safe on v5e/v6e/v7x (<= default scoped VMEM everywhere but v5e)

# TODO(synk): nn.Dropout layers are modeled as eval-mode identity (no stochastic masking).
# TODO(synk): for very long sequences, block over KV (flash-style online softmax) instead of
#             materializing the full (Tq, Tk) score tile per batch step.


def _round_up(x, m):
    return (x + m - 1) // m * m


# --------------------------------------------------------------------------------------
# Fused multi-head-attention block kernel:
#   qkv projections -> per-head masked softmax attention -> out projection -> +residual -> LN
# Grid: (B,).  Weights use constant block indices so they are DMA'd once and stay resident.
# --------------------------------------------------------------------------------------
def _mha_block_kernel(xq_ref, xkv_ref, qvalid_ref, kvalid_ref,
                      wq_ref, bq_ref, wkv_ref, bkv_ref, wc_ref, bc_ref,
                      g_ref, beta_ref, o_ref, ctx_ref, *, n_head, causal, scale):
    Tq = xq_ref.shape[1]
    Tk = xkv_ref.shape[1]
    D = xq_ref.shape[2]
    Dh = D // n_head

    xq = xq_ref[0]                                     # (Tq, D) f32 -- also the residual
    xkv = xkv_ref[0]                                   # (Tk, D) f32

    # fused projections: bf16 MXU inputs, f32 accumulation
    q = jnp.dot(xq.astype(jnp.bfloat16), wq_ref[...],
                preferred_element_type=jnp.float32) + bq_ref[...]          # (Tq, D)
    kvp = jnp.dot(xkv.astype(jnp.bfloat16), wkv_ref[...],
                  preferred_element_type=jnp.float32) + bkv_ref[...]       # (Tk, 2D)
    k = kvp[:, :D]
    v = kvp[:, D:]

    # mask built in-kernel from per-token pad-validity vectors (+ causal iota)
    valid = (qvalid_ref[0] > 0.0) & (kvalid_ref[0] > 0.0)                  # (Tq,1)&(1,Tk)->(Tq,Tk)
    if causal:
        ri = jax.lax.broadcasted_iota(jnp.int32, (Tq, Tk), 0)
        ci = jax.lax.broadcasted_iota(jnp.int32, (Tq, Tk), 1)
        valid = valid & (ci <= ri)

    qb = q.astype(jnp.bfloat16)
    kb = k.astype(jnp.bfloat16)
    vb = v.astype(jnp.bfloat16)
    for h in range(n_head):                            # static unroll -> static lane slices
        qh = qb[:, h * Dh:(h + 1) * Dh]
        kh = kb[:, h * Dh:(h + 1) * Dh]
        vh = vb[:, h * Dh:(h + 1) * Dh]
        s = jax.lax.dot_general(qh, kh, (((1,), (1,)), ((), ())),
                                preferred_element_type=jnp.float32) * scale     # (Tq, Tk)
        s = jnp.where(valid, s, -1000.0)               # masked_fill(mask == 0, -1000)
        s = s - jnp.max(s, axis=-1, keepdims=True)     # numerically stable softmax (f32)
        p = jnp.exp(s)
        p = p * pl.reciprocal(jnp.sum(p, axis=-1, keepdims=True), approx=True)
        ctx_ref[:, h * Dh:(h + 1) * Dh] = jnp.dot(
            p.astype(jnp.bfloat16), vh, preferred_element_type=jnp.float32)

    # output projection + residual add + LayerNorm (fused epilogue)
    out = jnp.dot(ctx_ref[...].astype(jnp.bfloat16), wc_ref[...],
                  preferred_element_type=jnp.float32) + bc_ref[...]
    hres = out + xq
    mean = jnp.mean(hres, axis=-1, keepdims=True)
    var = jnp.mean(jnp.square(hres - mean), axis=-1, keepdims=True)
    o_ref[0] = (hres - mean) * jax.lax.rsqrt(var + EPS_LN) * g_ref[...] + beta_ref[...]


def mha_block(x_q, x_kv, q_valid, k_valid, p, gamma, beta, *, n_head, causal):
    B, Tq, D = x_q.shape
    Tk = x_kv.shape[1]
    Dh = D // n_head
    # Same broadcasting requirement as the reference masked_fill (lengths must match).
    assert q_valid.shape == (B, Tq, 1)
    assert k_valid.shape == (B, 1, Tk)

    kern = functools.partial(_mha_block_kernel, n_head=n_head, causal=causal,
                             scale=1.0 / math.sqrt(Dh))
    flops = 2 * B * (Tq * D * D + Tk * D * 2 * D + n_head * 2 * Tq * Tk * Dh + Tq * D * D)
    cost = pl.CostEstimate(
        flops=int(flops),
        transcendentals=int(B * n_head * Tq * Tk + B * Tq),
        bytes_accessed=int(4 * B * (2 * Tq * D + Tk * D + Tq + Tk) + 2 * 4 * D * D + 4 * 6 * D))

    return pl.pallas_call(
        kern,
        out_shape=jax.ShapeDtypeStruct((B, Tq, D), jnp.float32),
        grid=(B,),
        in_specs=[
            pl.BlockSpec((1, Tq, D), lambda b: (b, 0, 0)),      # x_q  (also residual)
            pl.BlockSpec((1, Tk, D), lambda b: (b, 0, 0)),      # x_kv
            pl.BlockSpec((1, Tq, 1), lambda b: (b, 0, 0)),      # query pad-validity
            pl.BlockSpec((1, 1, Tk), lambda b: (b, 0, 0)),      # key   pad-validity
            pl.BlockSpec((D, D), lambda b: (0, 0)),             # wq   (resident)
            pl.BlockSpec((1, D), lambda b: (0, 0)),             # bq
            pl.BlockSpec((D, 2 * D), lambda b: (0, 0)),         # wk|wv (resident)
            pl.BlockSpec((1, 2 * D), lambda b: (0, 0)),         # bk|bv
            pl.BlockSpec((D, D), lambda b: (0, 0)),             # w_combine (resident)
            pl.BlockSpec((1, D), lambda b: (0, 0)),             # b_combine
            pl.BlockSpec((1, D), lambda b: (0, 0)),             # LN gamma
            pl.BlockSpec((1, D), lambda b: (0, 0)),             # LN beta
        ],
        out_specs=pl.BlockSpec((1, Tq, D), lambda b: (b, 0, 0)),
        scratch_shapes=[pltpu.VMEM((Tq, D), jnp.float32)],      # concatenated head context
        compiler_params=pltpu.CompilerParams(
            dimension_semantics=("parallel",),
            vmem_limit_bytes=VMEM_LIMIT),
        cost_estimate=cost,
    )(x_q, x_kv, q_valid, k_valid,
      p["wq"], p["bq"], p["wkv"], p["bkv"], p["wc"], p["bc"], gamma, beta)


# --------------------------------------------------------------------------------------
# Fused feed-forward block kernel: fc1 + ReLU + fc2 + residual + LayerNorm.
# Grid: (M tiles,).  The (TM, ffn_hidden) intermediate never leaves VMEM.
# --------------------------------------------------------------------------------------
def _ffn_block_kernel(x_ref, w1_ref, b1_ref, w2_ref, b2_ref, g_ref, beta_ref, o_ref):
    x = x_ref[...]                                                          # (TM, D) f32
    h = jnp.dot(x.astype(jnp.bfloat16), w1_ref[...],
                preferred_element_type=jnp.float32) + b1_ref[...]           # (TM, Hf)
    h = jnp.maximum(h, 0.0)
    y = jnp.dot(h.astype(jnp.bfloat16), w2_ref[...],
                preferred_element_type=jnp.float32) + b2_ref[...] + x       # + residual
    mean = jnp.mean(y, axis=-1, keepdims=True)
    var = jnp.mean(jnp.square(y - mean), axis=-1, keepdims=True)
    o_ref[...] = (y - mean) * jax.lax.rsqrt(var + EPS_LN) * g_ref[...] + beta_ref[...]


def ffn_block(x2d, p, gamma, beta):
    M, D = x2d.shape
    Hf = p["w1"].shape[1]
    TM = min(256, _round_up(M, 8))
    Mp = _round_up(M, TM)
    xp = jnp.pad(x2d, ((0, Mp - M), (0, 0))) if Mp != M else x2d
    cost = pl.CostEstimate(flops=int(4 * Mp * D * Hf), transcendentals=int(Mp),
                           bytes_accessed=int(4 * 2 * Mp * D + 2 * 2 * D * Hf))
    out = pl.pallas_call(
        _ffn_block_kernel,
        out_shape=jax.ShapeDtypeStruct((Mp, D), jnp.float32),
        grid=(Mp // TM,),
        in_specs=[
            pl.BlockSpec((TM, D), lambda i: (i, 0)),
            pl.BlockSpec((D, Hf), lambda i: (0, 0)),            # weights resident across M
            pl.BlockSpec((1, Hf), lambda i: (0, 0)),
            pl.BlockSpec((Hf, D), lambda i: (0, 0)),
            pl.BlockSpec((1, D), lambda i: (0, 0)),
            pl.BlockSpec((1, D), lambda i: (0, 0)),             # LN gamma
            pl.BlockSpec((1, D), lambda i: (0, 0)),             # LN beta
        ],
        out_specs=pl.BlockSpec((TM, D), lambda i: (i, 0)),
        compiler_params=pltpu.CompilerParams(
            dimension_semantics=("parallel",),
            vmem_limit_bytes=VMEM_LIMIT),
        cost_estimate=cost,
    )(xp, p["w1"], p["b1"], p["w2"], p["b2"], gamma, beta)
    return out[:M]


# --------------------------------------------------------------------------------------
# Tiled output (vocab) projection.  Grid (N tiles, M tiles) -- M is the inner axis so the
# weight tile stays resident in VMEM across it.  K = d_model fits a single block here.
# --------------------------------------------------------------------------------------
def _linear_kernel(x_ref, w_ref, b_ref, o_ref):
    o_ref[...] = (jnp.dot(x_ref[...].astype(jnp.bfloat16), w_ref[...],
                          preferred_element_type=jnp.float32) + b_ref[...])


def linear_tiled(x2d, w, b):
    M, K = x2d.shape
    N = w.shape[1]
    TM = min(256, _round_up(M, 8))
    TN = N if N <= 512 else 512
    Mp = _round_up(M, TM)
    Np = _round_up(N, TN)
    xp = jnp.pad(x2d, ((0, Mp - M), (0, 0))) if Mp != M else x2d
    wp = jnp.pad(w, ((0, 0), (0, Np - N))) if Np != N else w
    bp = jnp.pad(b, ((0, 0), (0, Np - N))) if Np != N else b
    cost = pl.CostEstimate(flops=int(2 * Mp * K * Np), transcendentals=0,
                           bytes_accessed=int(4 * Mp * K + 2 * K * Np + 4 * Mp * Np))
    out = pl.pallas_call(
        _linear_kernel,
        out_shape=jax.ShapeDtypeStruct((Mp, Np), jnp.float32),
        grid=(Np // TN, Mp // TM),                  # N outer, M inner -> weight tile resident
        in_specs=[
            pl.BlockSpec((TM, K), lambda j, i: (i, 0)),
            pl.BlockSpec((K, TN), lambda j, i: (0, j)),
            pl.BlockSpec((1, TN), lambda j, i: (0, j)),
        ],
        out_specs=pl.BlockSpec((TM, TN), lambda j, i: (i, j)),
        compiler_params=pltpu.CompilerParams(
            dimension_semantics=("parallel", "parallel"),
            vmem_limit_bytes=VMEM_LIMIT),
        cost_estimate=cost,
    )(xp, wp, bp)
    return out[:M, :N]


# --------------------------------------------------------------------------------------
# model blocks
# --------------------------------------------------------------------------------------
def encoder_layer(x, p, qv_src, kv_src, n_head):
    B, T, D = x.shape
    x = mha_block(x, x, qv_src, kv_src, p["attn"], p["g1"], p["b1"],
                  n_head=n_head, causal=False)
    x = ffn_block(x.reshape(B * T, D), p["ffn"], p["g2"], p["b2"]).reshape(B, T, D)
    return x


def decoder_layer(x, enc, p, qv_trg, kv_src, kv_trg, n_head):
    B, T, D = x.shape
    # NOTE: mask routing mirrors the reference module *exactly*: Transformer.forward passes
    # (trg_mask, src_trg_mask) into Decoder.forward(dec, enc, s_mask, t_mask), so the decoder
    # self-attention receives the (trg,src) pad mask with NO causal term, and the cross
    # attention receives the causal (trg,trg) mask.  (Requires len(src) == len(trg), as in
    # the reference.)
    x = mha_block(x, x, qv_trg, kv_src, p["attn1"], p["g1"], p["b1"],
                  n_head=n_head, causal=False)
    x = mha_block(x, enc, qv_trg, kv_trg, p["attn2"], p["g2"], p["b2"],
                  n_head=n_head, causal=True)
    x = ffn_block(x.reshape(B * T, D), p["ffn"], p["g3"], p["b3"]).reshape(B, T, D)
    return x


# ----------------------------- embeddings / glue (plain JAX) -----------------------------
def make_pos_encoding(max_len, d_model):
    pos = jnp.arange(max_len, dtype=jnp.float32)[:, None]
    _2i = jnp.arange(0, d_model, 2, dtype=jnp.float32)
    ang = pos / (10000.0 ** (_2i / d_model))
    enc = jnp.zeros((max_len, d_model), jnp.float32)
    enc = enc.at[:, 0::2].set(jnp.sin(ang))
    enc = enc.at[:, 1::2].set(jnp.cos(ang))
    return enc


# ----------------------------- parameter init (deterministic, synthetic) -----------------------------
def _init_linear(key, fan_in, fan_out):
    k1, k2 = jax.random.split(key)
    w = (jax.random.normal(k1, (fan_in, fan_out), jnp.float32) * 0.05).astype(jnp.bfloat16)
    b = jax.random.normal(k2, (1, fan_out), jnp.float32) * 0.05
    return w, b


def _init_attn(key, d_model):
    kq, kk, kv, kc = jax.random.split(key, 4)
    wq, bq = _init_linear(kq, d_model, d_model)
    wk, bk = _init_linear(kk, d_model, d_model)
    wv, bv = _init_linear(kv, d_model, d_model)
    wc, bc = _init_linear(kc, d_model, d_model)
    return {"wq": wq, "bq": bq,
            "wkv": jnp.concatenate([wk, wv], axis=1),       # fused K|V projection weight
            "bkv": jnp.concatenate([bk, bv], axis=1),
            "wc": wc, "bc": bc}


def _init_ffn(key, d_model, hidden):
    k1, k2 = jax.random.split(key)
    w1, b1 = _init_linear(k1, d_model, hidden)
    w2, b2 = _init_linear(k2, hidden, d_model)
    return {"w1": w1, "b1": b1, "w2": w2, "b2": b2}


def _ln_params(d_model):
    return jnp.ones((1, d_model), jnp.float32), jnp.zeros((1, d_model), jnp.float32)


def init_params(key, enc_voc, dec_voc, max_len, d_model, ffn_hidden, n_layers):
    keys = jax.random.split(key, 6)
    enc_tok = jax.random.normal(keys[0], (enc_voc, d_model), jnp.float32) * 0.05
    dec_tok = jax.random.normal(keys[1], (dec_voc, d_model), jnp.float32) * 0.05
    enc_tok = enc_tok.at[1].set(0.0)   # TokenEmbedding padding_idx=1 row is zero
    dec_tok = dec_tok.at[1].set(0.0)

    enc_layers = []
    for i in range(n_layers):
        k = jax.random.fold_in(keys[2], i)
        ka, kf = jax.random.split(k)
        g1, b1 = _ln_params(d_model)
        g2, b2 = _ln_params(d_model)
        enc_layers.append({"attn": _init_attn(ka, d_model),
                           "ffn": _init_ffn(kf, d_model, ffn_hidden),
                           "g1": g1, "b1": b1, "g2": g2, "b2": b2})

    dec_layers = []
    for i in range(n_layers):
        k = jax.random.fold_in(keys[3], i)
        ka1, ka2, kf = jax.random.split(k, 3)
        g1, b1 = _ln_params(d_model)
        g2, b2 = _ln_params(d_model)
        g3, b3 = _ln_params(d_model)
        dec_layers.append({"attn1": _init_attn(ka1, d_model),
                           "attn2": _init_attn(ka2, d_model),
                           "ffn": _init_ffn(kf, d_model, ffn_hidden),
                           "g1": g1, "b1": b1, "g2": g2, "b2": b2, "g3": g3, "b3": b3})

    w_out, b_out = _init_linear(keys[4], d_model, dec_voc)
    return {"enc_tok": enc_tok, "dec_tok": dec_tok,
            "pos_enc": make_pos_encoding(max_len, d_model),
            "enc_layers": enc_layers, "dec_layers": dec_layers,
            "w_out": w_out, "b_out": b_out}


# ----------------------------- full forward -----------------------------
def transformer_forward(params, src, trg, src_pad_idx, trg_pad_idx, n_head):
    B, Ls = src.shape
    Lt = trg.shape[1]
    src_valid = (src != src_pad_idx).astype(jnp.float32)      # (B, Ls)
    trg_valid = (trg != trg_pad_idx).astype(jnp.float32)      # (B, Lt)
    qv_src, kv_src = src_valid[:, :, None], src_valid[:, None, :]
    qv_trg, kv_trg = trg_valid[:, :, None], trg_valid[:, None, :]

    # encoder
    x = params["enc_tok"][src] + params["pos_enc"][:Ls]
    for lp in params["enc_layers"]:
        x = encoder_layer(x, lp, qv_src, kv_src, n_head)
    enc = x

    # decoder
    y = params["dec_tok"][trg] + params["pos_enc"][:Lt]
    for lp in params["dec_layers"]:
        y = decoder_layer(y, enc, lp, qv_trg, kv_src, kv_trg, n_head)

    D = y.shape[-1]
    logits = linear_tiled(y.reshape(B * Lt, D), params["w_out"], params["b_out"])
    return logits.reshape(B, Lt, -1)


# ----------------------------- main -----------------------------
if __name__ == "__main__":
    # small shapes consistent with the module (d_model scaled down)
    B, S = 2, 8
    d_model, n_head, ffn_hidden, n_layers = 32, 4, 64, 2
    enc_voc, dec_voc, max_len = 50, 60, 16
    src_pad_idx, trg_pad_idx = 1, 1

    key = jax.random.PRNGKey(0)
    kp, ks, kt = jax.random.split(key, 3)
    params = init_params(kp, enc_voc, dec_voc, max_len, d_model, ffn_hidden, n_layers)

    src = jax.random.randint(ks, (B, S), 0, enc_voc, dtype=jnp.int32)
    trg = jax.random.randint(kt, (B, S), 0, dec_voc, dtype=jnp.int32)

    fwd = jax.jit(functools.partial(transformer_forward,
                                    src_pad_idx=src_pad_idx,
                                    trg_pad_idx=trg_pad_idx,
                                    n_head=n_head))
    out = jax.block_until_ready(fwd(params, src, trg))
    assert out.shape == (B, S, dec_voc), out.shape
    assert bool(jnp.all(jnp.isfinite(out)))
    print("KERNEL_OK")
</pallas_src>

<mosaic_0001>
module attributes {stable_mosaic.version = 11 : i64} {
  func.func @_ffn_block_kernel(%arg0: i32, %arg1: memref<16x32xf32, #tpu.memory_space<vmem>>, %arg2: memref<32x64xbf16, #tpu.memory_space<vmem>>, %arg3: memref<1x64xf32, #tpu.memory_space<vmem>>, %arg4: memref<64x32xbf16, #tpu.memory_space<vmem>>, %arg5: memref<1x32xf32, #tpu.memory_space<vmem>>, %arg6: memref<1x32xf32, #tpu.memory_space<vmem>>, %arg7: memref<1x32xf32, #tpu.memory_space<vmem>>, %arg8: memref<16x32xf32, #tpu.memory_space<vmem>>) attributes {dimension_semantics = [#tpu.dimension_semantics<parallel>], iteration_bounds = array<i64: 1>, scalar_prefetch = 0 : i64, scratch_operands = 0 : i64, tpu.core_type = #tpu.core_type<tc>, window_params = [{transform_indices = @transform_0, window_bounds = array<i64: 16, 32>}, {pipeline_mode = #tpu.pipeline_mode<synchronous>, transform_indices = @transform_1, window_bounds = array<i64: 32, 64>}, {pipeline_mode = #tpu.pipeline_mode<synchronous>, transform_indices = @transform_2, window_bounds = array<i64: 1, 64>}, {pipeline_mode = #tpu.pipeline_mode<synchronous>, transform_indices = @transform_3, window_bounds = array<i64: 64, 32>}, {pipeline_mode = #tpu.pipeline_mode<synchronous>, transform_indices = @transform_4, window_bounds = array<i64: 1, 32>}, {pipeline_mode = #tpu.pipeline_mode<synchronous>, transform_indices = @transform_5, window_bounds = array<i64: 1, 32>}, {pipeline_mode = #tpu.pipeline_mode<synchronous>, transform_indices = @transform_6, window_bounds = array<i64: 1, 32>}, {transform_indices = @transform_7, window_bounds = array<i64: 16, 32>}]} {
    %c0 = arith.constant 0 : index
    %c0_0 = arith.constant 0 : index
    %0 = vector.load %arg1[%c0, %c0_0] : memref<16x32xf32, #tpu.memory_space<vmem>>, vector<16x32xf32>
    %1 = arith.truncf %0 : vector<16x32xf32> to vector<16x32xbf16>
    %c0_1 = arith.constant 0 : index
    %c0_2 = arith.constant 0 : index
    %2 = vector.load %arg2[%c0_1, %c0_2] : memref<32x64xbf16, #tpu.memory_space<vmem>>, vector<32x64xbf16>
    %cst = arith.constant dense<0.000000e+00> : vector<16x64xf32>
    %3 = tpu.matmul %1, %2, %cst {dimension_numbers = #tpu.dot_dimension_numbers<[1], [0], [0], [1], [0, 0, 1, 1], [], []>} : vector<16x32xbf16>, vector<32x64xbf16>, vector<16x64xf32> -> vector<16x64xf32>
    %c0_3 = arith.constant 0 : index
    %c0_4 = arith.constant 0 : index
    %4 = vector.load %arg3[%c0_3, %c0_4] : memref<1x64xf32, #tpu.memory_space<vmem>>, vector<1x64xf32>
    %5 = vector.broadcast %4 : vector<1x64xf32> to vector<16x64xf32>
    %6 = arith.addf %3, %5 : vector<16x64xf32>
    %cst_5 = arith.constant 0.000000e+00 : f32
    %7 = vector.broadcast %cst_5 : f32 to vector<16x64xf32>
    %8 = arith.maximumf %6, %7 : vector<16x64xf32>
    %9 = arith.truncf %8 : vector<16x64xf32> to vector<16x64xbf16>
    %c0_6 = arith.constant 0 : index
    %c0_7 = arith.constant 0 : index
    %10 = vector.load %arg4[%c0_6, %c0_7] : memref<64x32xbf16, #tpu.memory_space<vmem>>, vector<64x32xbf16>
    %cst_8 = arith.constant dense<0.000000e+00> : vector<16x32xf32>
    %11 = tpu.matmul %9, %10, %cst_8 {dimension_numbers = #tpu.dot_dimension_numbers<[1], [0], [0], [1], [0, 0, 1, 1], [], []>} : vector<16x64xbf16>, vector<64x32xbf16>, vector<16x32xf32> -> vector<16x32xf32>
    %c0_9 = arith.constant 0 : index
    %c0_10 = arith.constant 0 : index
    %12 = vector.load %arg5[%c0_9, %c0_10] : memref<1x32xf32, #tpu.memory_space<vmem>>, vector<1x32xf32>
    %13 = vector.broadcast %12 : vector<1x32xf32> to vector<16x32xf32>
    %14 = arith.addf %11, %13 : vector<16x32xf32>
    %15 = arith.addf %14, %0 : vector<16x32xf32>
    %cst_11 = arith.constant dense<0.000000e+00> : vector<16xf32>
    %16 = vector.multi_reduction <add>, %15, %cst_11 [1] : vector<16x32xf32> to vector<16xf32>
    %17 = vector.shape_cast %16 : vector<16xf32> to vector<16x1xf32>
    %cst_12 = arith.constant 3.200000e+01 : f32
    %18 = vector.broadcast %cst_12 : f32 to vector<16x1xf32>
    %19 = arith.divf %17, %18 : vector<16x1xf32>
    %20 = vector.broadcast %19 : vector<16x1xf32> to vector<16x32xf32>
    %21 = arith.subf %15, %20 : vector<16x32xf32>
    %22 = arith.mulf %21, %21 : vector<16x32xf32>
    %cst_13 = arith.constant dense<0.000000e+00> : vector<16xf32>
    %23 = vector.multi_reduction <add>, %22, %cst_13 [1] : vector<16x32xf32> to vector<16xf32>
    %24 = vector.shape_cast %23 : vector<16xf32> to vector<16x1xf32>
    %cst_14 = arith.constant 3.200000e+01 : f32
    %25 = vector.broadcast %cst_14 : f32 to vector<16x1xf32>
    %26 = arith.divf %24, %25 : vector<16x1xf32>
    %27 = vector.broadcast %19 : vector<16x1xf32> to vector<16x32xf32>
    %28 = arith.subf %15, %27 : vector<16x32xf32>
    %cst_15 = arith.constant 1.000000e-10 : f32
    %29 = vector.broadcast %cst_15 : f32 to vector<16x1xf32>
    %30 = arith.addf %26, %29 : vector<16x1xf32>
    %31 = math.rsqrt %30 : vector<16x1xf32>
    %32 = vector.broadcast %31 : vector<16x1xf32> to vector<16x32xf32>
    %33 = arith.mulf %28, %32 : vector<16x32xf32>
    %c0_16 = arith.constant 0 : index
    %c0_17 = arith.constant 0 : index
    %34 = vector.load %arg6[%c0_16, %c0_17] : memref<1x32xf32, #tpu.memory_space<vmem>>, vector<1x32xf32>
    %35 = vector.broadcast %34 : vector<1x32xf32> to vector<16x32xf32>
    %36 = arith.mulf %33, %35 : vector<16x32xf32>
    %c0_18 = arith.constant 0 : index
    %c0_19 = arith.constant 0 : index
    %37 = vector.load %arg7[%c0_18, %c0_19] : memref<1x32xf32, #tpu.memory_space<vmem>>, vector<1x32xf32>
    %38 = vector.broadcast %37 : vector<1x32xf32> to vector<16x32xf32>
    %39 = arith.addf %36, %38 : vector<16x32xf32>
    %c0_20 = arith.constant 0 : index
    %c0_21 = arith.constant 0 : index
    %40 = vector.load %arg8[%c0_20, %c0_21] : memref<16x32xf32, #tpu.memory_space<vmem>>, vector<16x32xf32>
    tpu.vector_store %arg8[%c0_20, %c0_21], %39 {strides = array<i32>} : memref<16x32xf32, #tpu.memory_space<vmem>>, vector<16x32xf32>,
    return
  }
  func.func @transform_0(%arg0: i32) -> (i32, i32) {
    %c0_i32 = arith.constant 0 : i32
    %c0_i32_0 = arith.constant 0 : i32
    return %arg0, %c0_i32 : i32, i32
  }
  func.func @transform_1(%arg0: i32) -> (i32, i32) {
    %c0_i32 = arith.constant 0 : i32
    %c0_i32_0 = arith.constant 0 : i32
    %c0_i32_1 = arith.constant 0 : i32
    return %c0_i32, %c0_i32_0 : i32, i32
  }
  func.func @transform_2(%arg0: i32) -> (i32, i32) {
    %c0_i32 = arith.constant 0 : i32
    %c0_i32_0 = arith.constant 0 : i32
    %c0_i32_1 = arith.constant 0 : i32
    return %c0_i32, %c0_i32_0 : i32, i32
  }
  func.func @transform_3(%arg0: i32) -> (i32, i32) {
    %c0_i32 = arith.constant 0 : i32
    %c0_i32_0 = arith.constant 0 : i32
    %c0_i32_1 = arith.constant 0 : i32
    return %c0_i32, %c0_i32_0 : i32, i32
  }
  func.func @transform_4(%arg0: i32) -> (i32, i32) {
    %c0_i32 = arith.constant 0 : i32
    %c0_i32_0 = arith.constant 0 : i32
    %c0_i32_1 = arith.constant 0 : i32
    return %c0_i32, %c0_i32_0 : i32, i32
  }
  func.func @transform_5(%arg0: i32) -> (i32, i32) {
    %c0_i32 = arith.constant 0 : i32
    %c0_i32_0 = arith.constant 0 : i32
    %c0_i32_1 = arith.constant 0 : i32
    return %c0_i32, %c0_i32_0 : i32, i32
  }
  func.func @transform_6(%arg0: i32) -> (i32, i32) {
    %c0_i32 = arith.constant 0 : i32
    %c0_i32_0 = arith.constant 0 : i32
    %c0_i32_1 = arith.constant 0 : i32
    return %c0_i32, %c0_i32_0 : i32, i32
  }
  func.func @transform_7(%arg0: i32) -> (i32, i32) {
    %c0_i32 = arith.constant 0 : i32
    %c0_i32_0 = arith.constant 0 : i32
    return %arg0, %c0_i32 : i32, i32
  }
}

module attributes {stable_mosaic.version = 11 : i64} {
  func.func @_mha_block_kernel(%arg0: i32, %arg1: memref<1x8x32xf32, #tpu.memory_space<vmem>>, %arg2: memref<1x8x32xf32, #tpu.memory_space<vmem>>, %arg3: memref<1x8x1xf32, #tpu.memory_space<vmem>>, %arg4: memref<1x1x8xf32, #tpu.memory_space<vmem>>, %arg5: memref<32x32xbf16, #tpu.memory_space<vmem>>, %arg6: memref<1x32xf32, #tpu.memory_space<vmem>>, %arg7: memref<32x64xbf16, #tpu.memory_space<vmem>>, %arg8: memref<1x64xf32, #tpu.memory_space<vmem>>, %arg9: memref<32x32xbf16, #tpu.memory_space<vmem>>, %arg10: memref<1x32xf32, #tpu.memory_space<vmem>>, %arg11: memref<1x32xf32, #tpu.memory_space<vmem>>, %arg12: memref<1x32xf32, #tpu.memory_space<vmem>>, %arg13: memref<1x8x32xf32, #tpu.memory_space<vmem>>, %arg14: memref<8x32xf32, #tpu.memory_space<vmem>>) attributes {dimension_semantics = [#tpu.dimension_semantics<parallel>], iteration_bounds = array<i64: 2>, scalar_prefetch = 0 : i64, scratch_operands = 1 : i64, tpu.core_type = #tpu.core_type<tc>, window_params = [{transform_indices = @transform_0, window_bounds = array<i64: 1, 8, 32>}, {transform_indices = @transform_1, window_bounds = array<i64: 1, 8, 32>}, {transform_indices = @transform_2, window_bounds = array<i64: 1, 8, 1>}, {transform_indices = @transform_3, window_bounds = array<i64: 1, 1, 8>}, {pipeline_mode = #tpu.pipeline_mode<synchronous>, transform_indices = @transform_4, window_bounds = array<i64: 32, 32>}, {pipeline_mode = #tpu.pipeline_mode<synchronous>, transform_indices = @transform_5, window_bounds = array<i64: 1, 32>}, {pipeline_mode = #tpu.pipeline_mode<synchronous>, transform_indices = @transform_6, window_bounds = array<i64: 32, 64>}, {pipeline_mode = #tpu.pipeline_mode<synchronous>, transform_indices = @transform_7, window_bounds = array<i64: 1, 64>}, {pipeline_mode = #tpu.pipeline_mode<synchronous>, transform_indices = @transform_8, window_bounds = array<i64: 32, 32>}, {pipeline_mode = #tpu.pipeline_mode<synchronous>, transform_indices = @transform_9, window_bounds = array<i64: 1, 32>}, {pipeline_mode = #tpu.pipeline_mode<synchronous>, transform_indices = @transform_10, window_bounds = array<i64: 1, 32>}, {pipeline_mode = #tpu.pipeline_mode<synchronous>, transform_indices = @transform_11, window_bounds = array<i64: 1, 32>}, {transform_indices = @transform_12, window_bounds = array<i64: 1, 8, 32>}]} {
    %c0 = arith.constant 0 : index
    %c0_0 = arith.constant 0 : index
    %c0_1 = arith.constant 0 : index
    %0 = vector.load %arg1[%c0, %c0_0, %c0_1] : memref<1x8x32xf32, #tpu.memory_space<vmem>>, vector<1x8x32xf32>
    %1 = vector.shape_cast %0 : vector<1x8x32xf32> to vector<8x32xf32>
    %c0_2 = arith.constant 0 : index
    %c0_3 = arith.constant 0 : index
    %c0_4 = arith.constant 0 : index
    %2 = vector.load %arg2[%c0_2, %c0_3, %c0_4] : memref<1x8x32xf32, #tpu.memory_space<vmem>>, vector<1x8x32xf32>
    %3 = vector.shape_cast %2 : vector<1x8x32xf32> to vector<8x32xf32>
    %4 = arith.truncf %1 : vector<8x32xf32> to vector<8x32xbf16>
    %c0_5 = arith.constant 0 : index
    %c0_6 = arith.constant 0 : index
    %5 = vector.load %arg5[%c0_5, %c0_6] : memref<32x32xbf16, #tpu.memory_space<vmem>>, vector<32x32xbf16>
    %cst = arith.constant dense<0.000000e+00> : vector<8x32xf32>
    %6 = tpu.matmul %4, %5, %cst {dimension_numbers = #tpu.dot_dimension_numbers<[1], [0], [0], [1], [0, 0, 1, 1], [], []>} : vector<8x32xbf16>, vector<32x32xbf16>, vector<8x32xf32> -> vector<8x32xf32>
    %c0_7 = arith.constant 0 : index
    %c0_8 = arith.constant 0 : index
    %7 = vector.load %arg6[%c0_7, %c0_8] : memref<1x32xf32, #tpu.memory_space<vmem>>, vector<1x32xf32>
    %8 = vector.broadcast %7 : vector<1x32xf32> to vector<8x32xf32>
    %9 = arith.addf %6, %8 : vector<8x32xf32>
    %10 = arith.truncf %3 : vector<8x32xf32> to vector<8x32xbf16>
    %c0_9 = arith.constant 0 : index
    %c0_10 = arith.constant 0 : index
    %11 = vector.load %arg7[%c0_9, %c0_10] : memref<32x64xbf16, #tpu.memory_space<vmem>>, vector<32x64xbf16>
    %cst_11 = arith.constant dense<0.000000e+00> : vector<8x64xf32>
    %12 = tpu.matmul %10, %11, %cst_11 {dimension_numbers = #tpu.dot_dimension_numbers<[1], [0], [0], [1], [0, 0, 1, 1], [], []>} : vector<8x32xbf16>, vector<32x64xbf16>, vector<8x64xf32> -> vector<8x64xf32>
    %c0_12 = arith.constant 0 : index
    %c0_13 = arith.constant 0 : index
    %13 = vector.load %arg8[%c0_12, %c0_13] : memref<1x64xf32, #tpu.memory_space<vmem>>, vector<1x64xf32>
    %14 = vector.broadcast %13 : vector<1x64xf32> to vector<8x64xf32>
    %15 = arith.addf %12, %14 : vector<8x64xf32>
    %16 = vector.extract_strided_slice %15 {offsets = [0, 0], sizes = [8, 32], strides = [1, 1]} : vector<8x64xf32> to vector<8x32xf32>
    %17 = vector.extract_strided_slice %15 {offsets = [0, 32], sizes = [8, 32], strides = [1, 1]} : vector<8x64xf32> to vector<8x32xf32>
    %c0_14 = arith.constant 0 : index
    %c0_15 = arith.constant 0 : index
    %c0_16 = arith.constant 0 : index
    %18 = vector.load %arg3[%c0_14, %c0_15, %c0_16] : memref<1x8x1xf32, #tpu.memory_space<vmem>>, vector<1x8x1xf32>
    %19 = vector.shape_cast %18 : vector<1x8x1xf32> to vector<8x1xf32>
    %cst_17 = arith.constant 0.000000e+00 : f32
    %20 = vector.broadcast %cst_17 : f32 to vector<8x1xf32>
    %21 = arith.cmpf ogt, %19, %20 : vector<8x1xf32>
    %c0_18 = arith.constant 0 : index
    %c0_19 = arith.constant 0 : index
    %c0_20 = arith.constant 0 : index
    %22 = vector.load %arg4[%c0_18, %c0_19, %c0_20] : memref<1x1x8xf32, #tpu.memory_space<vmem>>, vector<1x1x8xf32>
    %23 = vector.shape_cast %22 : vector<1x1x8xf32> to vector<1x8xf32>
    %cst_21 = arith.constant 0.000000e+00 : f32
    %24 = vector.broadcast %cst_21 : f32 to vector<1x8xf32>
    %25 = arith.cmpf ogt, %23, %24 : vector<1x8xf32>
    %26 = vector.broadcast %21 : vector<8x1xi1> to vector<8x8xi1>
    %27 = vector.broadcast %25 : vector<1x8xi1> to vector<8x8xi1>
    %28 = arith.andi %26, %27 : vector<8x8xi1>
    %29 = arith.truncf %9 : vector<8x32xf32> to vector<8x32xbf16>
    %30 = arith.truncf %16 : vector<8x32xf32> to vector<8x32xbf16>
    %31 = arith.truncf %17 : vector<8x32xf32> to vector<8x32xbf16>
    %32 = vector.extract_strided_slice %29 {offsets = [0, 0], sizes = [8, 8], strides = [1, 1]} : vector<8x32xbf16> to vector<8x8xbf16>
    %33 = vector.extract_strided_slice %30 {offsets = [0, 0], sizes = [8, 8], strides = [1, 1]} : vector<8x32xbf16> to vector<8x8xbf16>
    %34 = vector.extract_strided_slice %31 {offsets = [0, 0], sizes = [8, 8], strides = [1, 1]} : vector<8x32xbf16> to vector<8x8xbf16>
    %cst_22 = arith.constant dense<0.000000e+00> : vector<8x8xf32>
    %35 = tpu.matmul %32, %33, %cst_22 {dimension_numbers = #tpu.dot_dimension_numbers<[1], [1], [0], [0], [0, 0, 1, 0], [], []>} : vector<8x8xbf16>, vector<8x8xbf16>, vector<8x8xf32> -> vector<8x8xf32>
    %cst_23 = arith.constant 0.353553385 : f32
    %36 = vector.broadcast %cst_23 : f32 to vector<8x8xf32>
    %37 = arith.mulf %35, %36 : vector<8x8xf32>
    %cst_24 = arith.constant -1.000000e+03 : f32
    %38 = vector.broadcast %cst_24 : f32 to vector<8x8xf32>
    %39 = arith.select %28, %37, %38 : vector<8x8xi1>, vector<8x8xf32>
    %cst_25 = arith.constant dense<0xFF800000> : vector<8xf32>
    %40 = vector.multi_reduction <maximumf>, %39, %cst_25 [1] : vector<8x8xf32> to vector<8xf32>
    %41 = vector.shape_cast %40 : vector<8xf32> to vector<8x1xf32>
    %42 = vector.broadcast %41 : vector<8x1xf32> to vector<8x8xf32>
    %43 = arith.subf %39, %42 : vector<8x8xf32>
    %44 = math.exp %43 : vector<8x8xf32>
    %cst_26 = arith.constant dense<0.000000e+00> : vector<8xf32>
    %45 = vector.multi_reduction <add>, %44, %cst_26 [1] : vector<8x8xf32> to vector<8xf32>
    %46 = vector.shape_cast %45 : vector<8xf32> to vector<8x1xf32>
    %47 = tpu.reciprocal %46 {approx = true} : vector<8x1xf32> -> vector<8x1xf32>
    %48 = vector.broadcast %47 : vector<8x1xf32> to vector<8x8xf32>
    %49 = arith.mulf %44, %48 : vector<8x8xf32>
    %50 = arith.truncf %49 : vector<8x8xf32> to vector<8x8xbf16>
    %cst_27 = arith.constant dense<0.000000e+00> : vector<8x8xf32>
    %51 = tpu.matmul %50, %34, %cst_27 {dimension_numbers = #tpu.dot_dimension_numbers<[1], [0], [0], [1], [0, 0, 1, 1], [], []>} : vector<8x8xbf16>, vector<8x8xbf16>, vector<8x8xf32> -> vector<8x8xf32>
    %c0_28 = arith.constant 0 : index
    %c0_29 = arith.constant 0 : index
    %52 = vector.load %arg14[%c0_28, %c0_29] : memref<8x32xf32, #tpu.memory_space<vmem>>, vector<8x8xf32>
    tpu.vector_store %arg14[%c0_28, %c0_29], %51 {strides = array<i32>} : memref<8x32xf32, #tpu.memory_space<vmem>>, vector<8x8xf32>,
    %53 = vector.extract_strided_slice %29 {offsets = [0, 8], sizes = [8, 8], strides = [1, 1]} : vector<8x32xbf16> to vector<8x8xbf16>
    %54 = vector.extract_strided_slice %30 {offsets = [0, 8], sizes = [8, 8], strides = [1, 1]} : vector<8x32xbf16> to vector<8x8xbf16>
    %55 = vector.extract_strided_slice %31 {offsets = [0, 8], sizes = [8, 8], strides = [1, 1]} : vector<8x32xbf16> to vector<8x8xbf16>
    %cst_30 = arith.constant dense<0.000000e+00> : vector<8x8xf32>
    %56 = tpu.matmul %53, %54, %cst_30 {dimension_numbers = #tpu.dot_dimension_numbers<[1], [1], [0], [0], [0, 0, 1, 0], [], []>} : vector<8x8xbf16>, vector<8x8xbf16>, vector<8x8xf32> -> vector<8x8xf32>
    %cst_31 = arith.constant 0.353553385 : f32
    %57 = vector.broadcast %cst_31 : f32 to vector<8x8xf32>
    %58 = arith.mulf %56, %57 : vector<8x8xf32>
    %cst_32 = arith.constant -1.000000e+03 : f32
    %59 = vector.broadcast %cst_32 : f32 to vector<8x8xf32>
    %60 = arith.select %28, %58, %59 : vector<8x8xi1>, vector<8x8xf32>
    %cst_33 = arith.constant dense<0xFF800000> : vector<8xf32>
    %61 = vector.multi_reduction <maximumf>, %60, %cst_33 [1] : vector<8x8xf32> to vector<8xf32>
    %62 = vector.shape_cast %61 : vector<8xf32> to vector<8x1xf32>
    %63 = vector.broadcast %62 : vector<8x1xf32> to vector<8x8xf32>
    %64 = arith.subf %60, %63 : vector<8x8xf32>
    %65 = math.exp %64 : vector<8x8xf32>
    %cst_34 = arith.constant dense<0.000000e+00> : vector<8xf32>
    %66 = vector.multi_reduction <add>, %65, %cst_34 [1] : vector<8x8xf32> to vector<8xf32>
    %67 = vector.shape_cast %66 : vector<8xf32> to vector<8x1xf32>
    %68 = tpu.reciprocal %67 {approx = true} : vector<8x1xf32> -> vector<8x1xf32>
    %69 = vector.broadcast %68 : vector<8x1xf32> to vector<8x8xf32>
    %70 = arith.mulf %65, %69 : vector<8x8xf32>
    %71 = arith.truncf %70 : vector<8x8xf32> to vector<8x8xbf16>
    %cst_35 = arith.constant dense<0.000000e+00> : vector<8x8xf32>
    %72 = tpu.matmul %71, %55, %cst_35 {dimension_numbers = #tpu.dot_dimension_numbers<[1], [0], [0], [1], [0, 0, 1, 1], [], []>} : vector<8x8xbf16>, vector<8x8xbf16>, vector<8x8xf32> -> vector<8x8xf32>
    %c0_36 = arith.constant 0 : index
    %c8 = arith.constant 8 : index
    %73 = vector.load %arg14[%c0_36, %c8] : memref<8x32xf32, #tpu.memory_space<vmem>>, vector<8x8xf32>
    tpu.vector_store %arg14[%c0_36, %c8], %72 {strides = array<i32>} : memref<8x32xf32, #tpu.memory_space<vmem>>, vector<8x8xf32>,
    %74 = vector.extract_strided_slice %29 {offsets = [0, 16], sizes = [8, 8], strides = [1, 1]} : vector<8x32xbf16> to vector<8x8xbf16>
    %75 = vector.extract_strided_slice %30 {offsets = [0, 16], sizes = [8, 8], strides = [1, 1]} : vector<8x32xbf16> to vector<8x8xbf16>
    %76 = vector.extract_strided_slice %31 {offsets = [0, 16], sizes = [8, 8], strides = [1, 1]} : vector<8x32xbf16> to vector<8x8xbf16>
    %cst_37 = arith.constant dense<0.000000e+00> : vector<8x8xf32>
    %77 = tpu.matmul %74, %75, %cst_37 {dimension_numbers = #tpu.dot_dimension_numbers<[1], [1], [0], [0], [0, 0, 1, 0], [], []>} : vector<8x8xbf16>, vector<8x8xbf16>, vector<8x8xf32> -> vector<8x8xf32>
    %cst_38 = arith.constant 0.353553385 : f32
    %78 = vector.broadcast %cst_38 : f32 to vector<8x8xf32>
    %79 = arith.mulf %77, %78 : vector<8x8xf32>
    %cst_39 = arith.constant -1.000000e+03 : f32
    %80 = vector.broadcast %cst_39 : f32 to vector<8x8xf32>
    %81 = arith.select %28, %79, %80 : vector<8x8xi1>, vector<8x8xf32>
    %cst_40 = arith.constant dense<0xFF800000> : vector<8xf32>
    %82 = vector.multi_reduction <maximumf>, %81, %cst_40 [1] : vector<8x8xf32> to vector<8xf32>
    %83 = vector.shape_cast %82 : vector<8xf32> to vector<8x1xf32>
    %84 = vector.broadcast %83 : vector<8x1xf32> to vector<8x8xf32>
    %85 = arith.subf %81, %84 : vector<8x8xf32>
    %86 = math.exp %85 : vector<8x8xf32>
    %cst_41 = arith.constant dense<0.000000e+00> : vector<8xf32>
    %87 = vector.multi_reduction <add>, %86, %cst_41 [1] : vector<8x8xf32> to vector<8xf32>
    %88 = vector.shape_cast %87 : vector<8xf32> to vector<8x1xf32>
    %89 = tpu.reciprocal %88 {approx = true} : vector<8x1xf32> -> vector<8x1xf32>
    %90 = vector.broadcast %89 : vector<8x1xf32> to vector<8x8xf32>
    %91 = arith.mulf %86, %90 : vector<8x8xf32>
    %92 = arith.truncf %91 : vector<8x8xf32> to vector<8x8xbf16>
    %cst_42 = arith.constant dense<0.000000e+00> : vector<8x8xf32>
    %93 = tpu.matmul %92, %76, %cst_42 {dimension_numbers = #tpu.dot_dimension_numbers<[1], [0], [0], [1], [0, 0, 1, 1], [], []>} : vector<8x8xbf16>, vector<8x8xbf16>, vector<8x8xf32> -> vector<8x8xf32>
    %c0_43 = arith.constant 0 : index
    %c16 = arith.constant 16 : index
    %94 = vector.load %arg14[%c0_43, %c16] : memref<8x32xf32, #tpu.memory_space<vmem>>, vector<8x8xf32>
    tpu.vector_store %arg14[%c0_43, %c16], %93 {strides = array<i32>} : memref<8x32xf32, #tpu.memory_space<vmem>>, vector<8x8xf32>,
    %95 = vector.extract_strided_slice %29 {offsets = [0, 24], sizes = [8, 8], strides = [1, 1]} : vector<8x32xbf16> to vector<8x8xbf16>
    %96 = vector.extract_strided_slice %30 {offsets = [0, 24], sizes = [8, 8], strides = [1, 1]} : vector<8x32xbf16> to vector<8x8xbf16>
    %97 = vector.extract_strided_slice %31 {offsets = [0, 24], sizes = [8, 8], strides = [1, 1]} : vector<8x32xbf16> to vector<8x8xbf16>
    %cst_44 = arith.constant dense<0.000000e+00> : vector<8x8xf32>
    %98 = tpu.matmul %95, %96, %cst_44 {dimension_numbers = #tpu.dot_dimension_numbers<[1], [1], [0], [0], [0, 0, 1, 0], [], []>} : vector<8x8xbf16>, vector<8x8xbf16>, vector<8x8xf32> -> vector<8x8xf32>
    %cst_45 = arith.constant 0.353553385 : f32
    %99 = vector.broadcast %cst_45 : f32 to vector<8x8xf32>
    %100 = arith.mulf %98, %99 : vector<8x8xf32>
    %cst_46 = arith.constant -1.000000e+03 : f32
    %101 = vector.broadcast %cst_46 : f32 to vector<8x8xf32>
    %102 = arith.select %28, %100, %101 : vector<8x8xi1>, vector<8x8xf32>
    %cst_47 = arith.constant dense<0xFF800000> : vector<8xf32>
    %103 = vector.multi_reduction <maximumf>, %102, %cst_47 [1] : vector<8x8xf32> to vector<8xf32>
    %104 = vector.shape_cast %103 : vector<8xf32> to vector<8x1xf32>
    %105 = vector.broadcast %104 : vector<8x1xf32> to vector<8x8xf32>
    %106 = arith.subf %102, %105 : vector<8x8xf32>
    %107 = math.exp %106 : vector<8x8xf32>
    %cst_48 = arith.constant dense<0.000000e+00> : vector<8xf32>
    %108 = vector.multi_reduction <add>, %107, %cst_48 [1] : vector<8x8xf32> to vector<8xf32>
    %109 = vector.shape_cast %108 : vector<8xf32> to vector<8x1xf32>
    %110 = tpu.reciprocal %109 {approx = true} : vector<8x1xf32> -> vector<8x1xf32>
    %111 = vector.broadcast %110 : vector<8x1xf32> to vector<8x8xf32>
    %112 = arith.mulf %107, %111 : vector<8x8xf32>
    %113 = arith.truncf %112 : vector<8x8xf32> to vector<8x8xbf16>
    %cst_49 = arith.constant dense<0.000000e+00> : vector<8x8xf32>
    %114 = tpu.matmul %113, %97, %cst_49 {dimension_numbers = #tpu.dot_dimension_numbers<[1], [0], [0], [1], [0, 0, 1, 1], [], []>} : vector<8x8xbf16>, vector<8x8xbf16>, vector<8x8xf32> -> vector<8x8xf32>
    %c0_50 = arith.constant 0 : index
    %c24 = arith.constant 24 : index
    %115 = vector.load %arg14[%c0_50, %c24] : memref<8x32xf32, #tpu.memory_space<vmem>>, vector<8x8xf32>
    tpu.vector_store %arg14[%c0_50, %c24], %114 {strides = array<i32>} : memref<8x32xf32, #tpu.memory_space<vmem>>, vector<8x8xf32>,
    %c0_51 = arith.constant 0 : index
    %c0_52 = arith.constant 0 : index
    %116 = vector.load %arg14[%c0_51, %c0_52] : memref<8x32xf32, #tpu.memory_space<vmem>>, vector<8x32xf32>
    %117 = arith.truncf %116 : vector<8x32xf32> to vector<8x32xbf16>
    %c0_53 = arith.constant 0 : index
    %c0_54 = arith.constant 0 : index
    %118 = vector.load %arg9[%c0_53, %c0_54] : memref<32x32xbf16, #tpu.memory_space<vmem>>, vector<32x32xbf16>
    %cst_55 = arith.constant dense<0.000000e+00> : vector<8x32xf32>
    %119 = tpu.matmul %117, %118, %cst_55 {dimension_numbers = #tpu.dot_dimension_numbers<[1], [0], [0], [1], [0, 0, 1, 1], [], []>} : vector<8x32xbf16>, vector<32x32xbf16>, vector<8x32xf32> -> vector<8x32xf32>
    %c0_56 = arith.constant 0 : index
    %c0_57 = arith.constant 0 : index
    %120 = vector.load %arg10[%c0_56, %c0_57] : memref<1x32xf32, #tpu.memory_space<vmem>>, vector<1x32xf32>
    %121 = vector.broadcast %120 : vector<1x32xf32> to vector<8x32xf32>
    %122 = arith.addf %119, %121 : vector<8x32xf32>
    %123 = arith.addf %122, %1 : vector<8x32xf32>
    %cst_58 = arith.constant dense<0.000000e+00> : vector<8xf32>
    %124 = vector.multi_reduction <add>, %123, %cst_58 [1] : vector<8x32xf32> to vector<8xf32>
    %125 = vector.shape_cast %124 : vector<8xf32> to vector<8x1xf32>
    %cst_59 = arith.constant 3.200000e+01 : f32
    %126 = vector.broadcast %cst_59 : f32 to vector<8x1xf32>
    %127 = arith.divf %125, %126 : vector<8x1xf32>
    %128 = vector.broadcast %127 : vector<8x1xf32> to vector<8x32xf32>
    %129 = arith.subf %123, %128 : vector<8x32xf32>
    %130 = arith.mulf %129, %129 : vector<8x32xf32>
    %cst_60 = arith.constant dense<0.000000e+00> : vector<8xf32>
    %131 = vector.multi_reduction <add>, %130, %cst_60 [1] : vector<8x32xf32> to vector<8xf32>
    %132 = vector.shape_cast %131 : vector<8xf32> to vector<8x1xf32>
    %cst_61 = arith.constant 3.200000e+01 : f32
    %133 = vector.broadcast %cst_61 : f32 to vector<8x1xf32>
    %134 = arith.divf %132, %133 : vector<8x1xf32>
    %135 = vector.broadcast %127 : vector<8x1xf32> to vector<8x32xf32>
    %136 = arith.subf %123, %135 : vector<8x32xf32>
    %cst_62 = arith.constant 1.000000e-10 : f32
    %137 = vector.broadcast %cst_62 : f32 to vector<8x1xf32>
    %138 = arith.addf %134, %137 : vector<8x1xf32>
    %139 = math.rsqrt %138 : vector<8x1xf32>
    %140 = vector.broadcast %139 : vector<8x1xf32> to vector<8x32xf32>
    %141 = arith.mulf %136, %140 : vector<8x32xf32>
    %c0_63 = arith.constant 0 : index
    %c0_64 = arith.constant 0 : index
    %142 = vector.load %arg11[%c0_63, %c0_64] : memref<1x32xf32, #tpu.memory_space<vmem>>, vector<1x32xf32>
    %143 = vector.broadcast %142 : vector<1x32xf32> to vector<8x32xf32>
    %144 = arith.mulf %141, %143 : vector<8x32xf32>
    %c0_65 = arith.constant 0 : index
    %c0_66 = arith.constant 0 : index
    %145 = vector.load %arg12[%c0_65, %c0_66] : memref<1x32xf32, #tpu.memory_space<vmem>>, vector<1x32xf32>
    %146 = vector.broadcast %145 : vector<1x32xf32> to vector<8x32xf32>
    %147 = arith.addf %144, %146 : vector<8x32xf32>
    %c0_67 = arith.constant 0 : index
    %c0_68 = arith.constant 0 : index
    %c0_69 = arith.constant 0 : index
    %148 = vector.load %arg13[%c0_67, %c0_68, %c0_69] : memref<1x8x32xf32, #tpu.memory_space<vmem>>, vector<1x8x32xf32>
    %149 = vector.shape_cast %148 : vector<1x8x32xf32> to vector<8x32xf32>
    %150 = vector.shape_cast %147 : vector<8x32xf32> to vector<1x8x32xf32>
    tpu.vector_store %arg13[%c0_67, %c0_68, %c0_69], %150 {strides = array<i32>} : memref<1x8x32xf32, #tpu.memory_space<vmem>>, vector<1x8x32xf32>,
    return
  }
  func.func @transform_0(%arg0: i32) -> (i32, i32, i32) {
    %c0_i32 = arith.constant 0 : i32
    %c0_i32_0 = arith.constant 0 : i32
    %c0_i32_1 = arith.constant 0 : i32
    return %arg0, %c0_i32, %c0_i32_0 : i32, i32, i32
  }
  func.func @transform_1(%arg0: i32) -> (i32, i32, i32) {
    %c0_i32 = arith.constant 0 : i32
    %c0_i32_0 = arith.constant 0 : i32
    %c0_i32_1 = arith.constant 0 : i32
    return %arg0, %c0_i32, %c0_i32_0 : i32, i32, i32
  }
  func.func @transform_2(%arg0: i32) -> (i32, i32, i32) {
    %c0_i32 = arith.constant 0 : i32
    %c0_i32_0 = arith.constant 0 : i32
    %c0_i32_1 = arith.constant 0 : i32
    return %arg0, %c0_i32, %c0_i32_0 : i32, i32, i32
  }
  func.func @transform_3(%arg0: i32) -> (i32, i32, i32) {
    %c0_i32 = arith.constant 0 : i32
    %c0_i32_0 = arith.constant 0 : i32
    %c0_i32_1 = arith.constant 0 : i32
    return %arg0, %c0_i32, %c0_i32_0 : i32, i32, i32
  }
  func.func @transform_4(%arg0: i32) -> (i32, i32) {
    %c0_i32 = arith.constant 0 : i32
    %c0_i32_0 = arith.constant 0 : i32
    %c0_i32_1 = arith.constant 0 : i32
    return %c0_i32, %c0_i32_0 : i32, i32
  }
  func.func @transform_5(%arg0: i32) -> (i32, i32) {
    %c0_i32 = arith.constant 0 : i32
    %c0_i32_0 = arith.constant 0 : i32
    %c0_i32_1 = arith.constant 0 : i32
    return %c0_i32, %c0_i32_0 : i32, i32
  }
  func.func @transform_6(%arg0: i32) -> (i32, i32) {
    %c0_i32 = arith.constant 0 : i32
    %c0_i32_0 = arith.constant 0 : i32
    %c0_i32_1 = arith.constant 0 : i32
    return %c0_i32, %c0_i32_0 : i32, i32
  }
  func.func @transform_7(%arg0: i32) -> (i32, i32) {
    %c0_i32 = arith.constant 0 : i32
    %c0_i32_0 = arith.constant 0 : i32
    %c0_i32_1 = arith.constant 0 : i32
    return %c0_i32, %c0_i32_0 : i32, i32
  }
  func.func @transform_8(%arg0: i32) -> (i32, i32) {
    %c0_i32 = arith.constant 0 : i32
    %c0_i32_0 = arith.constant 0 : i32
    %c0_i32_1 = arith.constant 0 : i32
    return %c0_i32, %c0_i32_0 : i32, i32
  }
  func.func @transform_9(%arg0: i32) -> (i32, i32) {
    %c0_i32 = arith.constant 0 : i32
    %c0_i32_0 = arith.constant 0 : i32
    %c0_i32_1 = arith.constant 0 : i32
    return %c0_i32, %c0_i32_0 : i32, i32
  }
  func.func @transform_10(%arg0: i32) -> (i32, i32) {
    %c0_i32 = arith.constant 0 : i32
    %c0_i32_0 = arith.constant 0 : i32
    %c0_i32_1 = arith.constant 0 : i32
    return %c0_i32, %c0_i32_0 : i32, i32
  }
  func.func @transform_11(%arg0: i32) -> (i32, i32) {
    %c0_i32 = arith.constant 0 : i32
    %c0_i32_0 = arith.constant 0 : i32
    %c0_i32_1 = arith.constant 0 : i32
    return %c0_i32, %c0_i32_0 : i32, i32
  }
  func.func @transform_12(%arg0: i32) -> (i32, i32, i32) {
    %c0_i32 = arith.constant 0 : i32
    %c0_i32_0 = arith.constant 0 : i32
    %c0_i32_1 = arith.constant 0 : i32
    return %arg0, %c0_i32, %c0_i32_0 : i32, i32, i32
  }
}

module attributes {stable_mosaic.version = 11 : i64} {
  func.func @_linear_kernel(%arg0: i32, %arg1: i32, %arg2: memref<16x32xf32, #tpu.memory_space<vmem>>, %arg3: memref<32x60xbf16, #tpu.memory_space<vmem>>, %arg4: memref<1x60xf32, #tpu.memory_space<vmem>>, %arg5: memref<16x60xf32, #tpu.memory_space<vmem>>) attributes {dimension_semantics = [#tpu.dimension_semantics<parallel>, #tpu.dimension_semantics<parallel>], iteration_bounds = array<i64: 1, 1>, scalar_prefetch = 0 : i64, scratch_operands = 0 : i64, tpu.core_type = #tpu.core_type<tc>, window_params = [{transform_indices = @transform_0, window_bounds = array<i64: 16, 32>}, {transform_indices = @transform_1, window_bounds = array<i64: 32, 60>}, {transform_indices = @transform_2, window_bounds = array<i64: 1, 60>}, {transform_indices = @transform_3, window_bounds = array<i64: 16, 60>}]} {
    %c0 = arith.constant 0 : index
    %c0_0 = arith.constant 0 : index
    %0 = vector.load %arg2[%c0, %c0_0] : memref<16x32xf32, #tpu.memory_space<vmem>>, vector<16x32xf32>
    %1 = arith.truncf %0 : vector<16x32xf32> to vector<16x32xbf16>
    %c0_1 = arith.constant 0 : index
    %c0_2 = arith.constant 0 : index
    %2 = vector.load %arg3[%c0_1, %c0_2] : memref<32x60xbf16, #tpu.memory_space<vmem>>, vector<32x60xbf16>
    %cst = arith.constant dense<0.000000e+00> : vector<16x60xf32>
    %3 = tpu.matmul %1, %2, %cst {dimension_numbers = #tpu.dot_dimension_numbers<[1], [0], [0], [1], [0, 0, 1, 1], [], []>} : vector<16x32xbf16>, vector<32x60xbf16>, vector<16x60xf32> -> vector<16x60xf32>
    %c0_3 = arith.constant 0 : index
    %c0_4 = arith.constant 0 : index
    %4 = vector.load %arg4[%c0_3, %c0_4] : memref<1x60xf32, #tpu.memory_space<vmem>>, vector<1x60xf32>
    %5 = vector.broadcast %4 : vector<1x60xf32> to vector<16x60xf32>
    %6 = arith.addf %3, %5 : vector<16x60xf32>
    %c0_5 = arith.constant 0 : index
    %c0_6 = arith.constant 0 : index
    %7 = vector.load %arg5[%c0_5, %c0_6] : memref<16x60xf32, #tpu.memory_space<vmem>>, vector<16x60xf32>
    tpu.vector_store %arg5[%c0_5, %c0_6], %6 {strides = array<i32>} : memref<16x60xf32, #tpu.memory_space<vmem>>, vector<16x60xf32>,
    return
  }
  func.func @transform_0(%arg0: i32, %arg1: i32) -> (i32, i32) {
    %c0_i32 = arith.constant 0 : i32
    %c0_i32_0 = arith.constant 0 : i32
    return %arg1, %c0_i32 : i32, i32
  }
  func.func @transform_1(%arg0: i32, %arg1: i32) -> (i32, i32) {
    %c0_i32 = arith.constant 0 : i32
    %c0_i32_0 = arith.constant 0 : i32
    return %c0_i32, %arg0 : i32, i32
  }
  func.func @transform_2(%arg0: i32, %arg1: i32) -> (i32, i32) {
    %c0_i32 = arith.constant 0 : i32
    %c0_i32_0 = arith.constant 0 : i32
    return %c0_i32, %arg0 : i32, i32
  }
  func.func @transform_3(%arg0: i32, %arg1: i32) -> (i32, i32) {
    %c0_i32 = arith.constant 0 : i32
    return %arg1, %arg0 : i32, i32
  }
}

module attributes {stable_mosaic.version = 11 : i64} {
  func.func @_mha_block_kernel(%arg0: i32, %arg1: memref<1x8x32xf32, #tpu.memory_space<vmem>>, %arg2: memref<1x8x32xf32, #tpu.memory_space<vmem>>, %arg3: memref<1x8x1xf32, #tpu.memory_space<vmem>>, %arg4: memref<1x1x8xf32, #tpu.memory_space<vmem>>, %arg5: memref<32x32xbf16, #tpu.memory_space<vmem>>, %arg6: memref<1x32xf32, #tpu.memory_space<vmem>>, %arg7: memref<32x64xbf16, #tpu.memory_space<vmem>>, %arg8: memref<1x64xf32, #tpu.memory_space<vmem>>, %arg9: memref<32x32xbf16, #tpu.memory_space<vmem>>, %arg10: memref<1x32xf32, #tpu.memory_space<vmem>>, %arg11: memref<1x32xf32, #tpu.memory_space<vmem>>, %arg12: memref<1x32xf32, #tpu.memory_space<vmem>>, %arg13: memref<1x8x32xf32, #tpu.memory_space<vmem>>, %arg14: memref<8x32xf32, #tpu.memory_space<vmem>>) attributes {dimension_semantics = [#tpu.dimension_semantics<parallel>], iteration_bounds = array<i64: 2>, scalar_prefetch = 0 : i64, scratch_operands = 1 : i64, tpu.core_type = #tpu.core_type<tc>, window_params = [{transform_indices = @transform_0, window_bounds = array<i64: 1, 8, 32>}, {transform_indices = @transform_1, window_bounds = array<i64: 1, 8, 32>}, {transform_indices = @transform_2, window_bounds = array<i64: 1, 8, 1>}, {transform_indices = @transform_3, window_bounds = array<i64: 1, 1, 8>}, {pipeline_mode = #tpu.pipeline_mode<synchronous>, transform_indices = @transform_4, window_bounds = array<i64: 32, 32>}, {pipeline_mode = #tpu.pipeline_mode<synchronous>, transform_indices = @transform_5, window_bounds = array<i64: 1, 32>}, {pipeline_mode = #tpu.pipeline_mode<synchronous>, transform_indices = @transform_6, window_bounds = array<i64: 32, 64>}, {pipeline_mode = #tpu.pipeline_mode<synchronous>, transform_indices = @transform_7, window_bounds = array<i64: 1, 64>}, {pipeline_mode = #tpu.pipeline_mode<synchronous>, transform_indices = @transform_8, window_bounds = array<i64: 32, 32>}, {pipeline_mode = #tpu.pipeline_mode<synchronous>, transform_indices = @transform_9, window_bounds = array<i64: 1, 32>}, {pipeline_mode = #tpu.pipeline_mode<synchronous>, transform_indices = @transform_10, window_bounds = array<i64: 1, 32>}, {pipeline_mode = #tpu.pipeline_mode<synchronous>, transform_indices = @transform_11, window_bounds = array<i64: 1, 32>}, {transform_indices = @transform_12, window_bounds = array<i64: 1, 8, 32>}]} {
    %c0 = arith.constant 0 : index
    %c0_0 = arith.constant 0 : index
    %c0_1 = arith.constant 0 : index
    %0 = vector.load %arg1[%c0, %c0_0, %c0_1] : memref<1x8x32xf32, #tpu.memory_space<vmem>>, vector<1x8x32xf32>
    %1 = vector.shape_cast %0 : vector<1x8x32xf32> to vector<8x32xf32>
    %c0_2 = arith.constant 0 : index
    %c0_3 = arith.constant 0 : index
    %c0_4 = arith.constant 0 : index
    %2 = vector.load %arg2[%c0_2, %c0_3, %c0_4] : memref<1x8x32xf32, #tpu.memory_space<vmem>>, vector<1x8x32xf32>
    %3 = vector.shape_cast %2 : vector<1x8x32xf32> to vector<8x32xf32>
    %4 = arith.truncf %1 : vector<8x32xf32> to vector<8x32xbf16>
    %c0_5 = arith.constant 0 : index
    %c0_6 = arith.constant 0 : index
    %5 = vector.load %arg5[%c0_5, %c0_6] : memref<32x32xbf16, #tpu.memory_space<vmem>>, vector<32x32xbf16>
    %cst = arith.constant dense<0.000000e+00> : vector<8x32xf32>
    %6 = tpu.matmul %4, %5, %cst {dimension_numbers = #tpu.dot_dimension_numbers<[1], [0], [0], [1], [0, 0, 1, 1], [], []>} : vector<8x32xbf16>, vector<32x32xbf16>, vector<8x32xf32> -> vector<8x32xf32>
    %c0_7 = arith.constant 0 : index
    %c0_8 = arith.constant 0 : index
    %7 = vector.load %arg6[%c0_7, %c0_8] : memref<1x32xf32, #tpu.memory_space<vmem>>, vector<1x32xf32>
    %8 = vector.broadcast %7 : vector<1x32xf32> to vector<8x32xf32>
    %9 = arith.addf %6, %8 : vector<8x32xf32>
    %10 = arith.truncf %3 : vector<8x32xf32> to vector<8x32xbf16>
    %c0_9 = arith.constant 0 : index
    %c0_10 = arith.constant 0 : index
    %11 = vector.load %arg7[%c0_9, %c0_10] : memref<32x64xbf16, #tpu.memory_space<vmem>>, vector<32x64xbf16>
    %cst_11 = arith.constant dense<0.000000e+00> : vector<8x64xf32>
    %12 = tpu.matmul %10, %11, %cst_11 {dimension_numbers = #tpu.dot_dimension_numbers<[1], [0], [0], [1], [0, 0, 1, 1], [], []>} : vector<8x32xbf16>, vector<32x64xbf16>, vector<8x64xf32> -> vector<8x64xf32>
    %c0_12 = arith.constant 0 : index
    %c0_13 = arith.constant 0 : index
    %13 = vector.load %arg8[%c0_12, %c0_13] : memref<1x64xf32, #tpu.memory_space<vmem>>, vector<1x64xf32>
    %14 = vector.broadcast %13 : vector<1x64xf32> to vector<8x64xf32>
    %15 = arith.addf %12, %14 : vector<8x64xf32>
    %16 = vector.extract_strided_slice %15 {offsets = [0, 0], sizes = [8, 32], strides = [1, 1]} : vector<8x64xf32> to vector<8x32xf32>
    %17 = vector.extract_strided_slice %15 {offsets = [0, 32], sizes = [8, 32], strides = [1, 1]} : vector<8x64xf32> to vector<8x32xf32>
    %c0_14 = arith.constant 0 : index
    %c0_15 = arith.constant 0 : index
    %c0_16 = arith.constant 0 : index
    %18 = vector.load %arg3[%c0_14, %c0_15, %c0_16] : memref<1x8x1xf32, #tpu.memory_space<vmem>>, vector<1x8x1xf32>
    %19 = vector.shape_cast %18 : vector<1x8x1xf32> to vector<8x1xf32>
    %cst_17 = arith.constant 0.000000e+00 : f32
    %20 = vector.broadcast %cst_17 : f32 to vector<8x1xf32>
    %21 = arith.cmpf ogt, %19, %20 : vector<8x1xf32>
    %c0_18 = arith.constant 0 : index
    %c0_19 = arith.constant 0 : index
    %c0_20 = arith.constant 0 : index
    %22 = vector.load %arg4[%c0_18, %c0_19, %c0_20] : memref<1x1x8xf32, #tpu.memory_space<vmem>>, vector<1x1x8xf32>
    %23 = vector.shape_cast %22 : vector<1x1x8xf32> to vector<1x8xf32>
    %cst_21 = arith.constant 0.000000e+00 : f32
    %24 = vector.broadcast %cst_21 : f32 to vector<1x8xf32>
    %25 = arith.cmpf ogt, %23, %24 : vector<1x8xf32>
    %26 = vector.broadcast %21 : vector<8x1xi1> to vector<8x8xi1>
    %27 = vector.broadcast %25 : vector<1x8xi1> to vector<8x8xi1>
    %28 = arith.andi %26, %27 : vector<8x8xi1>
    %29 = tpu.iota {dimensions = array<i32: 0>} : vector<8x8xi32>
    %30 = tpu.iota {dimensions = array<i32: 1>} : vector<8x8xi32>
    %31 = arith.cmpi sle, %30, %29 : vector<8x8xi32>
    %32 = arith.andi %28, %31 : vector<8x8xi1>
    %33 = arith.truncf %9 : vector<8x32xf32> to vector<8x32xbf16>
    %34 = arith.truncf %16 : vector<8x32xf32> to vector<8x32xbf16>
    %35 = arith.truncf %17 : vector<8x32xf32> to vector<8x32xbf16>
    %36 = vector.extract_strided_slice %33 {offsets = [0, 0], sizes = [8, 8], strides = [1, 1]} : vector<8x32xbf16> to vector<8x8xbf16>
    %37 = vector.extract_strided_slice %34 {offsets = [0, 0], sizes = [8, 8], strides = [1, 1]} : vector<8x32xbf16> to vector<8x8xbf16>
    %38 = vector.extract_strided_slice %35 {offsets = [0, 0], sizes = [8, 8], strides = [1, 1]} : vector<8x32xbf16> to vector<8x8xbf16>
    %cst_22 = arith.constant dense<0.000000e+00> : vector<8x8xf32>
    %39 = tpu.matmul %36, %37, %cst_22 {dimension_numbers = #tpu.dot_dimension_numbers<[1], [1], [0], [0], [0, 0, 1, 0], [], []>} : vector<8x8xbf16>, vector<8x8xbf16>, vector<8x8xf32> -> vector<8x8xf32>
    %cst_23 = arith.constant 0.353553385 : f32
    %40 = vector.broadcast %cst_23 : f32 to vector<8x8xf32>
    %41 = arith.mulf %39, %40 : vector<8x8xf32>
    %cst_24 = arith.constant -1.000000e+03 : f32
    %42 = vector.broadcast %cst_24 : f32 to vector<8x8xf32>
    %43 = arith.select %32, %41, %42 : vector<8x8xi1>, vector<8x8xf32>
    %cst_25 = arith.constant dense<0xFF800000> : vector<8xf32>
    %44 = vector.multi_reduction <maximumf>, %43, %cst_25 [1] : vector<8x8xf32> to vector<8xf32>
    %45 = vector.shape_cast %44 : vector<8xf32> to vector<8x1xf32>
    %46 = vector.broadcast %45 : vector<8x1xf32> to vector<8x8xf32>
    %47 = arith.subf %43, %46 : vector<8x8xf32>
    %48 = math.exp %47 : vector<8x8xf32>
    %cst_26 = arith.constant dense<0.000000e+00> : vector<8xf32>
    %49 = vector.multi_reduction <add>, %48, %cst_26 [1] : vector<8x8xf32> to vector<8xf32>
    %50 = vector.shape_cast %49 : vector<8xf32> to vector<8x1xf32>
    %51 = tpu.reciprocal %50 {approx = true} : vector<8x1xf32> -> vector<8x1xf32>
    %52 = vector.broadcast %51 : vector<8x1xf32> to vector<8x8xf32>
    %53 = arith.mulf %48, %52 : vector<8x8xf32>
    %54 = arith.truncf %53 : vector<8x8xf32> to vector<8x8xbf16>
    %cst_27 = arith.constant dense<0.000000e+00> : vector<8x8xf32>
    %55 = tpu.matmul %54, %38, %cst_27 {dimension_numbers = #tpu.dot_dimension_numbers<[1], [0], [0], [1], [0, 0, 1, 1], [], []>} : vector<8x8xbf16>, vector<8x8xbf16>, vector<8x8xf32> -> vector<8x8xf32>
    %c0_28 = arith.constant 0 : index
    %c0_29 = arith.constant 0 : index
    %56 = vector.load %arg14[%c0_28, %c0_29] : memref<8x32xf32, #tpu.memory_space<vmem>>, vector<8x8xf32>
    tpu.vector_store %arg14[%c0_28, %c0_29], %55 {strides = array<i32>} : memref<8x32xf32, #tpu.memory_space<vmem>>, vector<8x8xf32>,
    %57 = vector.extract_strided_slice %33 {offsets = [0, 8], sizes = [8, 8], strides = [1, 1]} : vector<8x32xbf16> to vector<8x8xbf16>
    %58 = vector.extract_strided_slice %34 {offsets = [0, 8], sizes = [8, 8], strides = [1, 1]} : vector<8x32xbf16> to vector<8x8xbf16>
    %59 = vector.extract_strided_slice %35 {offsets = [0, 8], sizes = [8, 8], strides = [1, 1]} : vector<8x32xbf16> to vector<8x8xbf16>
    %cst_30 = arith.constant dense<0.000000e+00> : vector<8x8xf32>
    %60 = tpu.matmul %57, %58, %cst_30 {dimension_numbers = #tpu.dot_dimension_numbers<[1], [1], [0], [0], [0, 0, 1, 0], [], []>} : vector<8x8xbf16>, vector<8x8xbf16>, vector<8x8xf32> -> vector<8x8xf32>
    %cst_31 = arith.constant 0.353553385 : f32
    %61 = vector.broadcast %cst_31 : f32 to vector<8x8xf32>
    %62 = arith.mulf %60, %61 : vector<8x8xf32>
    %cst_32 = arith.constant -1.000000e+03 : f32
    %63 = vector.broadcast %cst_32 : f32 to vector<8x8xf32>
    %64 = arith.select %32, %62, %63 : vector<8x8xi1>, vector<8x8xf32>
    %cst_33 = arith.constant dense<0xFF800000> : vector<8xf32>
    %65 = vector.multi_reduction <maximumf>, %64, %cst_33 [1] : vector<8x8xf32> to vector<8xf32>
    %66 = vector.shape_cast %65 : vector<8xf32> to vector<8x1xf32>
    %67 = vector.broadcast %66 : vector<8x1xf32> to vector<8x8xf32>
    %68 = arith.subf %64, %67 : vector<8x8xf32>
    %69 = math.exp %68 : vector<8x8xf32>
    %cst_34 = arith.constant dense<0.000000e+00> : vector<8xf32>
    %70 = vector.multi_reduction <add>, %69, %cst_34 [1] : vector<8x8xf32> to vector<8xf32>
    %71 = vector.shape_cast %70 : vector<8xf32> to vector<8x1xf32>
    %72 = tpu.reciprocal %71 {approx = true} : vector<8x1xf32> -> vector<8x1xf32>
    %73 = vector.broadcast %72 : vector<8x1xf32> to vector<8x8xf32>
    %74 = arith.mulf %69, %73 : vector<8x8xf32>
    %75 = arith.truncf %74 : vector<8x8xf32> to vector<8x8xbf16>
    %cst_35 = arith.constant dense<0.000000e+00> : vector<8x8xf32>
    %76 = tpu.matmul %75, %59, %cst_35 {dimension_numbers = #tpu.dot_dimension_numbers<[1], [0], [0], [1], [0, 0, 1, 1], [], []>} : vector<8x8xbf16>, vector<8x8xbf16>, vector<8x8xf32> -> vector<8x8xf32>
    %c0_36 = arith.constant 0 : index
    %c8 = arith.constant 8 : index
    %77 = vector.load %arg14[%c0_36, %c8] : memref<8x32xf32, #tpu.memory_space<vmem>>, vector<8x8xf32>
    tpu.vector_store %arg14[%c0_36, %c8], %76 {strides = array<i32>} : memref<8x32xf32, #tpu.memory_space<vmem>>, vector<8x8xf32>,
    %78 = vector.extract_strided_slice %33 {offsets = [0, 16], sizes = [8, 8], strides = [1, 1]} : vector<8x32xbf16> to vector<8x8xbf16>
    %79 = vector.extract_strided_slice %34 {offsets = [0, 16], sizes = [8, 8], strides = [1, 1]} : vector<8x32xbf16> to vector<8x8xbf16>
    %80 = vector.extract_strided_slice %35 {offsets = [0, 16], sizes = [8, 8], strides = [1, 1]} : vector<8x32xbf16> to vector<8x8xbf16>
    %cst_37 = arith.constant dense<0.000000e+00> : vector<8x8xf32>
    %81 = tpu.matmul %78, %79, %cst_37 {dimension_numbers = #tpu.dot_dimension_numbers<[1], [1], [0], [0], [0, 0, 1, 0], [], []>} : vector<8x8xbf16>, vector<8x8xbf16>, vector<8x8xf32> -> vector<8x8xf32>
    %cst_38 = arith.constant 0.353553385 : f32
    %82 = vector.broadcast %cst_38 : f32 to vector<8x8xf32>
    %83 = arith.mulf %81, %82 : vector<8x8xf32>
    %cst_39 = arith.constant -1.000000e+03 : f32
    %84 = vector.broadcast %cst_39 : f32 to vector<8x8xf32>
    %85 = arith.select %32, %83, %84 : vector<8x8xi1>, vector<8x8xf32>
    %cst_40 = arith.constant dense<0xFF800000> : vector<8xf32>
    %86 = vector.multi_reduction <maximumf>, %85, %cst_40 [1] : vector<8x8xf32> to vector<8xf32>
    %87 = vector.shape_cast %86 : vector<8xf32> to vector<8x1xf32>
    %88 = vector.broadcast %87 : vector<8x1xf32> to vector<8x8xf32>
    %89 = arith.subf %85, %88 : vector<8x8xf32>
    %90 = math.exp %89 : vector<8x8xf32>
    %cst_41 = arith.constant dense<0.000000e+00> : vector<8xf32>
    %91 = vector.multi_reduction <add>, %90, %cst_41 [1] : vector<8x8xf32> to vector<8xf32>
    %92 = vector.shape_cast %91 : vector<8xf32> to vector<8x1xf32>
    %93 = tpu.reciprocal %92 {approx = true} : vector<8x1xf32> -> vector<8x1xf32>
    %94 = vector.broadcast %93 : vector<8x1xf32> to vector<8x8xf32>
    %95 = arith.mulf %90, %94 : vector<8x8xf32>
    %96 = arith.truncf %95 : vector<8x8xf32> to vector<8x8xbf16>
    %cst_42 = arith.constant dense<0.000000e+00> : vector<8x8xf32>
    %97 = tpu.matmul %96, %80, %cst_42 {dimension_numbers = #tpu.dot_dimension_numbers<[1], [0], [0], [1], [0, 0, 1, 1], [], []>} : vector<8x8xbf16>, vector<8x8xbf16>, vector<8x8xf32> -> vector<8x8xf32>
    %c0_43 = arith.constant 0 : index
    %c16 = arith.constant 16 : index
    %98 = vector.load %arg14[%c0_43, %c16] : memref<8x32xf32, #tpu.memory_space<vmem>>, vector<8x8xf32>
    tpu.vector_store %arg14[%c0_43, %c16], %97 {strides = array<i32>} : memref<8x32xf32, #tpu.memory_space<vmem>>, vector<8x8xf32>,
    %99 = vector.extract_strided_slice %33 {offsets = [0, 24], sizes = [8, 8], strides = [1, 1]} : vector<8x32xbf16> to vector<8x8xbf16>
    %100 = vector.extract_strided_slice %34 {offsets = [0, 24], sizes = [8, 8], strides = [1, 1]} : vector<8x32xbf16> to vector<8x8xbf16>
    %101 = vector.extract_strided_slice %35 {offsets = [0, 24], sizes = [8, 8], strides = [1, 1]} : vector<8x32xbf16> to vector<8x8xbf16>
    %cst_44 = arith.constant dense<0.000000e+00> : vector<8x8xf32>
    %102 = tpu.matmul %99, %100, %cst_44 {dimension_numbers = #tpu.dot_dimension_numbers<[1], [1], [0], [0], [0, 0, 1, 0], [], []>} : vector<8x8xbf16>, vector<8x8xbf16>, vector<8x8xf32> -> vector<8x8xf32>
    %cst_45 = arith.constant 0.353553385 : f32
    %103 = vector.broadcast %cst_45 : f32 to vector<8x8xf32>
    %104 = arith.mulf %102, %103 : vector<8x8xf32>
    %cst_46 = arith.constant -1.000000e+03 : f32
    %105 = vector.broadcast %cst_46 : f32 to vector<8x8xf32>
    %106 = arith.select %32, %104, %105 : vector<8x8xi1>, vector<8x8xf32>
    %cst_47 = arith.constant dense<0xFF800000> : vector<8xf32>
    %107 = vector.multi_reduction <maximumf>, %106, %cst_47 [1] : vector<8x8xf32> to vector<8xf32>
    %108 = vector.shape_cast %107 : vector<8xf32> to vector<8x1xf32>
    %109 = vector.broadcast %108 : vector<8x1xf32> to vector<8x8xf32>
    %110 = arith.subf %106, %109 : vector<8x8xf32>
    %111 = math.exp %110 : vector<8x8xf32>
    %cst_48 = arith.constant dense<0.000000e+00> : vector<8xf32>
    %112 = vector.multi_reduction <add>, %111, %cst_48 [1] : vector<8x8xf32> to vector<8xf32>
    %113 = vector.shape_cast %112 : vector<8xf32> to vector<8x1xf32>
    %114 = tpu.reciprocal %113 {approx = true} : vector<8x1xf32> -> vector<8x1xf32>
    %115 = vector.broadcast %114 : vector<8x1xf32> to vector<8x8xf32>
    %116 = arith.mulf %111, %115 : vector<8x8xf32>
    %117 = arith.truncf %116 : vector<8x8xf32> to vector<8x8xbf16>
    %cst_49 = arith.constant dense<0.000000e+00> : vector<8x8xf32>
    %118 = tpu.matmul %117, %101, %cst_49 {dimension_numbers = #tpu.dot_dimension_numbers<[1], [0], [0], [1], [0, 0, 1, 1], [], []>} : vector<8x8xbf16>, vector<8x8xbf16>, vector<8x8xf32> -> vector<8x8xf32>
    %c0_50 = arith.constant 0 : index
    %c24 = arith.constant 24 : index
    %119 = vector.load %arg14[%c0_50, %c24] : memref<8x32xf32, #tpu.memory_space<vmem>>, vector<8x8xf32>
    tpu.vector_store %arg14[%c0_50, %c24], %118 {strides = array<i32>} : memref<8x32xf32, #tpu.memory_space<vmem>>, vector<8x8xf32>,
    %c0_51 = arith.constant 0 : index
    %c0_52 = arith.constant 0 : index
    %120 = vector.load %arg14[%c0_51, %c0_52] : memref<8x32xf32, #tpu.memory_space<vmem>>, vector<8x32xf32>
    %121 = arith.truncf %120 : vector<8x32xf32> to vector<8x32xbf16>
    %c0_53 = arith.constant 0 : index
    %c0_54 = arith.constant 0 : index
    %122 = vector.load %arg9[%c0_53, %c0_54] : memref<32x32xbf16, #tpu.memory_space<vmem>>, vector<32x32xbf16>
    %cst_55 = arith.constant dense<0.000000e+00> : vector<8x32xf32>
    %123 = tpu.matmul %121, %122, %cst_55 {dimension_numbers = #tpu.dot_dimension_numbers<[1], [0], [0], [1], [0, 0, 1, 1], [], []>} : vector<8x32xbf16>, vector<32x32xbf16>, vector<8x32xf32> -> vector<8x32xf32>
    %c0_56 = arith.constant 0 : index
    %c0_57 = arith.constant 0 : index
    %124 = vector.load %arg10[%c0_56, %c0_57] : memref<1x32xf32, #tpu.memory_space<vmem>>, vector<1x32xf32>
    %125 = vector.broadcast %124 : vector<1x32xf32> to vector<8x32xf32>
    %126 = arith.addf %123, %125 : vector<8x32xf32>
    %127 = arith.addf %126, %1 : vector<8x32xf32>
    %cst_58 = arith.constant dense<0.000000e+00> : vector<8xf32>
    %128 = vector.multi_reduction <add>, %127, %cst_58 [1] : vector<8x32xf32> to vector<8xf32>
    %129 = vector.shape_cast %128 : vector<8xf32> to vector<8x1xf32>
    %cst_59 = arith.constant 3.200000e+01 : f32
    %130 = vector.broadcast %cst_59 : f32 to vector<8x1xf32>
    %131 = arith.divf %129, %130 : vector<8x1xf32>
    %132 = vector.broadcast %131 : vector<8x1xf32> to vector<8x32xf32>
    %133 = arith.subf %127, %132 : vector<8x32xf32>
    %134 = arith.mulf %133, %133 : vector<8x32xf32>
    %cst_60 = arith.constant dense<0.000000e+00> : vector<8xf32>
    %135 = vector.multi_reduction <add>, %134, %cst_60 [1] : vector<8x32xf32> to vector<8xf32>
    %136 = vector.shape_cast %135 : vector<8xf32> to vector<8x1xf32>
    %cst_61 = arith.constant 3.200000e+01 : f32
    %137 = vector.broadcast %cst_61 : f32 to vector<8x1xf32>
    %138 = arith.divf %136, %137 : vector<8x1xf32>
    %139 = vector.broadcast %131 : vector<8x1xf32> to vector<8x32xf32>
    %140 = arith.subf %127, %139 : vector<8x32xf32>
    %cst_62 = arith.constant 1.000000e-10 : f32
    %141 = vector.broadcast %cst_62 : f32 to vector<8x1xf32>
    %142 = arith.addf %138, %141 : vector<8x1xf32>
    %143 = math.rsqrt %142 : vector<8x1xf32>
    %144 = vector.broadcast %143 : vector<8x1xf32> to vector<8x32xf32>
    %145 = arith.mulf %140, %144 : vector<8x32xf32>
    %c0_63 = arith.constant 0 : index
    %c0_64 = arith.constant 0 : index
    %146 = vector.load %arg11[%c0_63, %c0_64] : memref<1x32xf32, #tpu.memory_space<vmem>>, vector<1x32xf32>
    %147 = vector.broadcast %146 : vector<1x32xf32> to vector<8x32xf32>
    %148 = arith.mulf %145, %147 : vector<8x32xf32>
    %c0_65 = arith.constant 0 : index
    %c0_66 = arith.constant 0 : index
    %149 = vector.load %arg12[%c0_65, %c0_66] : memref<1x32xf32, #tpu.memory_space<vmem>>, vector<1x32xf32>
    %150 = vector.broadcast %149 : vector<1x32xf32> to vector<8x32xf32>
    %151 = arith.addf %148, %150 : vector<8x32xf32>
    %c0_67 = arith.constant 0 : index
    %c0_68 = arith.constant 0 : index
    %c0_69 = arith.constant 0 : index
    %152 = vector.load %arg13[%c0_67, %c0_68, %c0_69] : memref<1x8x32xf32, #tpu.memory_space<vmem>>, vector<1x8x32xf32>
    %153 = vector.shape_cast %152 : vector<1x8x32xf32> to vector<8x32xf32>
    %154 = vector.shape_cast %151 : vector<8x32xf32> to vector<1x8x32xf32>
    tpu.vector_store %arg13[%c0_67, %c0_68, %c0_69], %154 {strides = array<i32>} : memref<1x8x32xf32, #tpu.memory_space<vmem>>, vector<1x8x32xf32>,
    return
  }
  func.func @transform_0(%arg0: i32) -> (i32, i32, i32) {
    %c0_i32 = arith.constant 0 : i32
    %c0_i32_0 = arith.constant 0 : i32
    %c0_i32_1 = arith.constant 0 : i32
    return %arg0, %c0_i32, %c0_i32_0 : i32, i32, i32
  }
  func.func @transform_1(%arg0: i32) -> (i32, i32, i32) {
    %c0_i32 = arith.constant 0 : i32
    %c0_i32_0 = arith.constant 0 : i32
    %c0_i32_1 = arith.constant 0 : i32
    return %arg0, %c0_i32, %c0_i32_0 : i32, i32, i32
  }
  func.func @transform_2(%arg0: i32) -> (i32, i32, i32) {
    %c0_i32 = arith.constant 0 : i32
    %c0_i32_0 = arith.constant 0 : i32
    %c0_i32_1 = arith.constant 0 : i32
    return %arg0, %c0_i32, %c0_i32_0 : i32, i32, i32
  }
  func.func @transform_3(%arg0: i32) -> (i32, i32, i32) {
    %c0_i32 = arith.constant 0 : i32
    %c0_i32_0 = arith.constant 0 : i32
    %c0_i32_1 = arith.constant 0 : i32
    return %arg0, %c0_i32, %c0_i32_0 : i32, i32, i32
  }
  func.func @transform_4(%arg0: i32) -> (i32, i32) {
    %c0_i32 = arith.constant 0 : i32
    %c0_i32_0 = arith.constant 0 : i32
    %c0_i32_1 = arith.constant 0 : i32
    return %c0_i32, %c0_i32_0 : i32, i32
  }
  func.func @transform_5(%arg0: i32) -> (i32, i32) {
    %c0_i32 = arith.constant 0 : i32
    %c0_i32_0 = arith.constant 0 : i32
    %c0_i32_1 = arith.constant 0 : i32
    return %c0_i32, %c0_i32_0 : i32, i32
  }
  func.func @transform_6(%arg0: i32) -> (i32, i32) {
    %c0_i32 = arith.constant 0 : i32
    %c0_i32_0 = arith.constant 0 : i32
    %c0_i32_1 = arith.constant 0 : i32
    return %c0_i32, %c0_i32_0 : i32, i32
  }
  func.func @transform_7(%arg0: i32) -> (i32, i32) {
    %c0_i32 = arith.constant 0 : i32
    %c0_i32_0 = arith.constant 0 : i32
    %c0_i32_1 = arith.constant 0 : i32
    return %c0_i32, %c0_i32_0 : i32, i32
  }
  func.func @transform_8(%arg0: i32) -> (i32, i32) {
    %c0_i32 = arith.constant 0 : i32
    %c0_i32_0 = arith.constant 0 : i32
    %c0_i32_1 = arith.constant 0 : i32
    return %c0_i32, %c0_i32_0 : i32, i32
  }
  func.func @transform_9(%arg0: i32) -> (i32, i32) {
    %c0_i32 = arith.constant 0 : i32
    %c0_i32_0 = arith.constant 0 : i32
    %c0_i32_1 = arith.constant 0 : i32
    return %c0_i32, %c0_i32_0 : i32, i32
  }
  func.func @transform_10(%arg0: i32) -> (i32, i32) {
    %c0_i32 = arith.constant 0 : i32
    %c0_i32_0 = arith.constant 0 : i32
    %c0_i32_1 = arith.constant 0 : i32
    return %c0_i32, %c0_i32_0 : i32, i32
  }
  func.func @transform_11(%arg0: i32) -> (i32, i32) {
    %c0_i32 = arith.constant 0 : i32
    %c0_i32_0 = arith.constant 0 : i32
    %c0_i32_1 = arith.constant 0 : i32
    return %c0_i32, %c0_i32_0 : i32, i32
  }
  func.func @transform_12(%arg0: i32) -> (i32, i32, i32) {
    %c0_i32 = arith.constant 0 : i32
    %c0_i32_0 = arith.constant 0 : i32
    %c0_i32_1 = arith.constant 0 : i32
    return %arg0, %c0_i32, %c0_i32_0 : i32, i32, i32
  }
}

</mosaic_0001>

<bundles_post_ra>
// kernel: transformer_forward.21
= control target key start
LH: loop header
LB: loop body
LE: loop exit
PB: predicated region body
PF: predicated region fallthrough
CT: control target
= control target key end

     0   :  { %v152_v1 = vmov 0.0   ;;  %vm153_vm0 = vmmov 0   ;;  %s204_s0 = inlined_call_operand.vmem [shape: f32[16,32], index: 0, kind: input, shape index: {}]   ;;  %s205_s1 = inlined_call_operand.vmem [shape: bf16[32,60], index: 1, kind: input, shape index: {}]   ;;  %s206_s2 = inlined_call_operand.vmem [shape: f32[1,60], index: 2, kind: input, shape index: {}]   ;;  %s207_s3 = inlined_call_operand.hbm [shape: f32[16,60], index: 3, kind: output, shape index: {}]  }
   0x1   :  { %v126_v0 = vld [vmem:[%s205_s1] sm:$0xff]   ;;  %113 = vmatprep.subr.bf16.mxu0 %v152_v1  ;;  %v127_v2 = vld [vmem:[%s205_s1 + $0x8] sm:$0xff]   ;;  %117 = vmatprep.mubr.msk.bf16.mxu0 %vm153_vm0, %v152_v1 }
   0x2   :  { %114 = vmatpush3.bf16.msra.mxu0 %v126_v0  ;;  %v16_v3 = vld [vmem:[%s204_s0] sm:$0xff]  ;;  %v17_v4 = vld [vmem:[%s204_s0 + $0x8] sm:$0xff] }
   0x3   :  { %115 = vmatprep.subr.bf16.mxu0 %v152_v1 }
   0x4   :  { %8 = vsyncpa [#allocation3], 0  ;;  %v18_v5 = vpack.c.bf16 %v17_v4, %v16_v3  ;;  %vm42_vm1 = vcmask 261120   ;;  %v106_v6 = vld [vmem:[%s206_s2] ss:$0 sm:$0xff]  ;;  %s154_s1 = smov [#allocation2]  }
   0x5   :  { %s95_s22 = sshll.u32 %s154_s1, 4  ;;  %vm87_vm2 = vcmask 490496   ;;  %s96_s22 = int_to_ptr.vmem [resolvable:$true] %s95_s22 }
   0x6   :  { %116 = vmatpush3.bf16.msra.mxu0 %v127_v2  ;;  %s128_s0 = scalar_lea.vmem %s96_s22, 256  ;;  %p133_p1 = scmp.lt.s32.totalorder %s96_s22, %s96_s22 }
   0x7   :  { %p129_p0 = scmp.ne.s32.totalorder %s96_s22, %s128_s0  ;;  %p134_p2 = scmp.lt.s32.totalorder %s128_s0, %s128_s0 }
   0x9   :  { %118 = vmatmul.mubr.msk.bf16.vlgmr.msra.gmra.mrb[0].mxu0 %vm42_vm1, %v18_v5  ;;  %p135_p3 = por %p134_p2, %p133_p1 }
   0xb   :  { %p136_p4 = pnand %p135_p3, %p129_p0 }
  0xdc   :  { %v80_v7 = vpop.f32.mrb[0].mxu0 }
  0xdd   :  { %v81_v8 = vadd.f32 %v106_v6, %v80_v7  ;;  %v119_v9 = vpop.f32.mrb[1].mxu0 }
  0xde   :  { %v83_v10 = vpop.f32.mrb[2].mxu0 }
  0xdf   :  { %88 = vst.msk [vmem:[#allocation2] sm:$0xff] %vm87_vm2, %v81_v8  ;;  %v84_v11 = vadd.f32 %v106_v6, %v83_v10  ;;  %v120_v12 = vpop.f32.mrb[3].mxu0 }
  0xe1   :  { %89 = vst.msk [vmem:[#allocation2 + $0x8] sm:$0xff] %vm87_vm2, %v84_v11 }
  0xe2   :  { %139 = shalt.err (!%p136_p4)
}
  0xe3   :  { %s140_s24 = scalar_lea.hbm %s207_s3, 256 }
  0xe4   :  { %p141_p5 = scmp.ne.s32.totalorder %s207_s3, %s140_s24  ;;  %p144_p6 = scmp.lt.u32.totalorder %s140_s24, %s207_s3 }
  0xe6   :  { %p146_p7 = pnand %p144_p6, %p141_p5 }
  0xe8   :  { %149 = shalt.err (!%p146_p7)
}
  0xe9   :  { %s155_s29 = smov 128   ;;  %s156_s30 = smov 8  }
  0xea   :  { %101 = dma.vmem_to_hbm [thread:$0]  %s96_s22, 256, %s207_s3, [#allocation3], %s155_s29, %s155_s29, %s156_s30  }
  0xeb   :  { %150 = dma.done.wait [#allocation3], 256  }
  0xec   :  { %151 = vsyncadd [#allocation3], 4294967040 }
  0xed   :  { %105 = vsyncpa [#allocation3], 1 }

// kernel: transformer_forward.12
= control target key start
LH: loop header
LB: loop body
LE: loop exit
PB: predicated region body
PF: predicated region fallthrough
CT: control target
= control target key end

     0   :  { %v290_v0 = vmov 0.0   ;;  %vm291_vm0 = vmmov 0   ;;  %vm53_vm1 = vcmask 261120   ;;  %vm140_vm2 = vcmask 523264   ;;  %s381_s1 = inlined_call_operand.vmem [shape: bf16[32,64], index: 1, kind: input, shape index: {}]   ;;  %s382_s0 = inlined_call_operand.vmem [shape: f32[16,32], index: 0, kind: input, shape index: {}]   ;;  %s383_s3 = inlined_call_operand.vmem [shape: bf16[64,32], index: 3, kind: input, shape index: {}]   ;;  %s384_s2 = inlined_call_operand.vmem [shape: f32[1,64], index: 2, kind: input, shape index: {}]   ;;  %s385_s4 = inlined_call_operand.vmem [shape: f32[1,32], index: 4, kind: input, shape index: {}]   ;;  %s386_s5 = inlined_call_operand.vmem [shape: f32[1,32], index: 5, kind: input, shape index: {}]   ;;  %s387_s6 = inlined_call_operand.vmem [shape: f32[1,32], index: 6, kind: input, shape index: {}]   ;;  %s388_s7 = inlined_call_operand.vmem [shape: f32[16,32], index: 7, kind: output, shape index: {}]  }
   0x1   :  { %258 = vmatprep.subr.bf16.mxu0 %v290_v0  ;;  %v280_v1 = vld [vmem:[%s381_s1] sm:$0xff]   ;;  %262 = vmatprep.mubr.msk.bf16.mxu0 %vm291_vm0, %v290_v0  ;;  %v281_v2 = vld [vmem:[%s381_s1 + $0x8] sm:$0xff]   ;;  %v284_v8 = vld [vmem:[%s383_s3 + $0x10] sm:$0xff]  }
   0x2   :  { %266 = vmatprep.subr.bf16.mxu1 %v290_v0  ;;  %274 = vmatprep.mubr.msk.bf16.mxu1 %vm291_vm0, %v290_v0  ;;  %v27_v3 = vld [vmem:[%s382_s0] sm:$0xff]  ;;  %v28_v4 = vld [vmem:[%s382_s0 + $0x8] sm:$0xff]  ;;  %v285_v9 = vld [vmem:[%s383_s3 + $0x18] sm:$0xff]  }
   0x3   :  { %259 = vmatpush3.bf16.msra.mxu0 %v280_v1  ;;  %v282_v5 = vld [vmem:[%s383_s3] sm:$0xff]   ;;  %v283_v6 = vld [vmem:[%s383_s3 + $0x8] sm:$0xff]   ;;  %v29_v7 = vpack.c.bf16 %v28_v4, %v27_v3 }
   0x4   :  { %260 = vmatprep.subr.bf16.mxu0 %v290_v0  ;;  %267 = vmatpush3.bf16.msra.mxu1 %v282_v5  ;;  %v238_v10 = vld [vmem:[%s384_s2] ss:$0 sm:$0xff] }
   0x5   :  { %268 = vmatprep.subr.bf16.mxu1 %v290_v0  ;;  %v242_v20 = vld [vmem:[%s385_s4] ss:$0 sm:$0xff] }
   0x6   :  { %v248_v48 = vld [vmem:[%s386_s5] ss:$0 sm:$0xff] }
   0x7   :  { %261 = vmatpush3.bf16.msra.mxu0 %v281_v2  ;;  %v249_v50 = vld [vmem:[%s387_s6] ss:$0 sm:$0xff] }
   0x8   :  { %269 = vmatpush3.bf16.msra.mxu1 %v283_v6 }
   0x9   :  { %270 = vmatprep.subr.bf16.mxu1 %v290_v0 }
   0xa   :  { %263 = vmatmul.mubr.msk.bf16.vlgmr.msra.gmra.mrb[0].mxu0 %vm53_vm1, %v29_v7 }
   0xc   :  { %271 = vmatpush3.bf16.msra.mxu1 %v284_v8 }
   0xd   :  { %272 = vmatprep.subr.bf16.mxu1 %v290_v0 }
  0x10   :  { %273 = vmatpush3.bf16.msra.mxu1 %v285_v9 }
  0xdd   :  { %v91_v11 = vpop.f32.mrb[0].mxu0 }
  0xde   :  { %v92_v12 = vadd.f32 %v238_v10, %v91_v11  ;;  %v264_v13 = vpop.f32.mrb[1].mxu0 }
  0xdf   :  { %v94_v14 = vpop.f32.mrb[2].mxu0 }
  0xe0   :  { %v95_v15 = vadd.f32 %v238_v10, %v94_v14  ;;  %v265_v16 = vpop.f32.mrb[3].mxu0  ;;  %v98_v17 = vmax.f32 %v92_v12, 0.0 }
  0xe2   :  { %v99_v18 = vmax.f32 %v95_v15, 0.0 }
  0xe4   :  { %v100_v19 = vpack.c.bf16 %v99_v18, %v98_v17 }
  0xe6   :  { %275 = vmatmul.mubr.msk.bf16.vlgmr.msra.gmra.mrb[0].mxu1 %vm140_vm2, %v100_v19 }
 0x1b9   :  { %v178_v21 = vpop.f32.mrb[0].mxu1 }
 0x1ba   :  { %v179_v22 = vadd.f32 %v242_v20, %v178_v21  ;;  %v276_v23 = vpop.f32.mrb[1].mxu1 }
 0x1bb   :  { %v181_v24 = vpop.f32.mrb[2].mxu1 }
 0x1bc   :  { %v182_v25 = vadd.f32 %v242_v20, %v181_v24  ;;  %v277_v26 = vpop.f32.mrb[3].mxu1  ;;  %v185_v27 = vadd.f32 %v179_v22, %v27_v3 }
 0x1be   :  { %v187_v28 = vsel %vm53_vm1, %v185_v27, 0.0  ;;  %v186_v29 = vadd.f32 %v182_v25, %v28_v4 }
 0x1bf   :  { %188 = vadd.xlane.f32.xlu0 %v187_v28 }
 0x1c0   :  { %v190_v30 = vsel %vm53_vm1, %v186_v29, 0.0 }
 0x1c3   :  { %191 = vadd.xlane.f32.xlu0 %v190_v30 }
 0x24c   :  { %v189_v31 = vpop.xlane.xlu0 %188 }
 0x24d   :  { %v194_v32 = vmul.f32 0.03125, %v189_v31 }
 0x24f   :  { %v196_v33 = vsub.f32 %v185_v27, %v194_v32 }
 0x250   :  { %v192_v34 = vpop.xlane.xlu0 %191 }
 0x251   :  { %v195_v35 = vmul.f32 0.03125, %v192_v34  ;;  %v198_v36 = vmul.f32 %v196_v33, %v196_v33 }
 0x253   :  { %v197_v37 = vsub.f32 %v186_v29, %v195_v35  ;;  %v200_v38 = vsel %vm53_vm1, %v198_v36, 0.0 }
 0x254   :  { %201 = vadd.xlane.f32.xlu1 %v200_v38 }
 0x255   :  { %v199_v39 = vmul.f32 %v197_v37, %v197_v37 }
 0x257   :  { %v203_v40 = vsel %vm53_vm1, %v199_v39, 0.0 }
 0x258   :  { %204 = vadd.xlane.f32.xlu1 %v203_v40 }
 0x2e1   :  { %v202_v41 = vpop.xlane.xlu1 %201 }
 0x2e2   :  { %v206_v42 = vmul.f32 0.03125, %v202_v41 }
 0x2e4   :  { %v208_v43 = vadd.f32 1e-10, %v206_v42 }
 0x2e5   :  { %v205_v44 = vpop.xlane.xlu1 %204 }
 0x2e6   :  { %286 = vrsqrt.f32 %v208_v43  ;;  %v207_v45 = vmul.f32 0.03125, %v205_v44 }
 0x2e8   :  { %v209_v46 = vadd.f32 1e-10, %v207_v45 }
 0x2ea   :  { %288 = vrsqrt.f32 %v209_v46 }
 0x2f0   :  { %v287_v47 = vpop.eup %286 }
 0x2f1   :  { %v212_v49 = vmul.f32 %v287_v47, %v196_v33 }
 0x2f3   :  { %v221_v51 = vmul.f32 %v248_v48, %v212_v49 }
 0x2f4   :  { %v289_v52 = vpop.eup %288 }
 0x2f5   :  { %v230_v53 = vadd.f32 %v249_v50, %v221_v51  ;;  %v213_v54 = vmul.f32 %v289_v52, %v197_v37 }
 0x2f7   :  { %232 = vst.msk [vmem:[%s388_s7] sm:$0xff] %vm53_vm1, %v230_v53  ;;  %v222_v55 = vmul.f32 %v248_v48, %v213_v54 }
 0x2f9   :  { %v231_v56 = vadd.f32 %v249_v50, %v222_v55 }
 0x2fb   :  { %233 = vst.msk [vmem:[%s388_s7 + $0x8] sm:$0xff] %vm53_vm1, %v231_v56 }

// kernel: transformer_forward.11
= control target key start
LH: loop header
LB: loop body
LE: loop exit
PB: predicated region body
PF: predicated region fallthrough
CT: control target
= control target key end

     0   :  { %s1528_s21 = smov 0   ;;  %s1694_s0 = inlined_call_operand.vmem [shape: f32[2,8,32], index: 0, kind: input, shape index: {}, may-alias: {0,1}]   ;;  %s1695_s1 = inlined_call_operand.vmem [shape: f32[2,8,32], index: 1, kind: input, shape index: {}, may-alias: {0,1}]   ;;  %s1696_s2 = inlined_call_operand.vmem [shape: f32[2,8,1], index: 2, kind: input, shape index: {}]   ;;  %s1697_s3 = inlined_call_operand.vmem [shape: f32[2,1,8], index: 3, kind: input, shape index: {}]   ;;  %s1698_s4 = inlined_call_operand.vmem [shape: bf16[32,32], index: 4, kind: input, shape index: {}]   ;;  %s1699_s5 = inlined_call_operand.vmem [shape: f32[1,32], index: 5, kind: input, shape index: {}]   ;;  %s1700_s6 = inlined_call_operand.vmem [shape: bf16[32,64], index: 6, kind: input, shape index: {}]   ;;  %s1701_s7 = inlined_call_operand.vmem [shape: f32[1,64], index: 7, kind: input, shape index: {}]   ;;  %s1702_s8 = inlined_call_operand.vmem [shape: bf16[32,32], index: 8, kind: input, shape index: {}]   ;;  %s1703_s9 = inlined_call_operand.vmem [shape: f32[1,32], index: 9, kind: input, shape index: {}]   ;;  %s1704_s10 = inlined_call_operand.vmem [shape: f32[1,32], index: 10, kind: input, shape index: {}]   ;;  %s1705_s11 = inlined_call_operand.vmem [shape: f32[1,32], index: 11, kind: input, shape index: {}]   ;;  %s1706_s12 = inlined_call_operand.vmem [shape: f32[2,8,32], index: 12, kind: output, shape index: {}]  }
   0x1 LB: > { %s1266_s22 = sadd.s32 4294967295, %s1448_s21   ;;  %p1270_p0 = scmp.ge.s32.totalorder %s1448_s21, 1  ;;  %s1448_s21 = sphi %s1528_s21, %s22_s21  }
   0x2   : > { %p387_p1 = scmp.lt.s32.totalorder %s1448_s21, 3 }
   0x4   : > { %p388_p2 = pnand %p1270_p0, %p387_p1 }
   0x5   : > { %v1418_v0 = vld [vmem:[%s1700_s6] sm:$0xff] (!%p388_p2)   ;;  %v1450_v1 = vmov (!%p388_p2), 0.0   ;;  %v1420_v3 = vld [vmem:[%s1700_s6 + $0x8] sm:$0xff] (!%p388_p2)   ;;  %vm1451_vm0 = vmmov (!%p388_p2), 0   ;;  %p438_p3 = scmp.lt.s32.totalorder (!%p388_p2), %s1266_s22, 1  ;;  %vm484_vm1 = vcmask (!%p388_p2), 261120   ;;  %v605_v36 = vlaneseq (!%p388_p2) }
   0x6   : > { %391 = sbr.rel (%p388_p2) target bundleno = 1781 (0x6f5), region = 68  ;;  %1332 = vmatprep.subr.bf16.mxu1 (!%p388_p2), %v1450_v1  ;;  %1324 = vmatprep.subr.bf16.mxu0 (!%p388_p2), %v1450_v1  ;;  %v1419_v2 = vld [vmem:[%s1698_s4] sm:$0xff] (!%p388_p2)   ;;  %v1421_v4 = vld [vmem:[%s1698_s4 + $0x8] sm:$0xff] (!%p388_p2)   ;;  %v1452_v9 = vmov (!%p388_p2), 0   ;;  %vm613_vm2 = vcmask (!%p388_p2), 64512   ;;  %s1453_s26 = smov (!%p388_p2), 112  }
   0x7   : > { %1333 = vmatpush3.bf16.msra.mxu1 (!%p388_p2), %v1418_v0  ;;  %1336 = vmatprep.mubr.msk.bf16.mxu1 (!%p388_p2), %vm1451_vm0, %v1450_v1  ;;  %v1279_v10 = vld [vmem:[%s1701_s7] ss:$0 sm:$0xff] (!%p388_p2)  ;;  %s1454_s27 = smov (!%p388_p2), 120   ;;  %s1455_s14 = smov (!%p388_p2), 104   ;;  %v606_v38 = vshrl.u32 (!%p388_p2), %v605_v36, 7  ;;  %vm680_vm8 = vcmask (!%p388_p2), 1043456  }
   0x8   : > { %1334 = vmatprep.subr.bf16.mxu1 (!%p388_p2), %v1450_v1  ;;  %1325 = vmatpush3.bf16.msra.mxu0 (!%p388_p2), %v1419_v2  ;;  %v1275_v11 = vld [vmem:[%s1699_s5] ss:$0 sm:$0xff] (!%p388_p2)  ;;  %s1457_s18 = smov (!%p388_p2), 80   ;;  %s1459_s20 = smov (!%p388_p2), 88   ;;  %vm842_vm9 = vcmask (!%p388_p2), 130112   ;;  %vm960_vm10 = vcmask (!%p388_p2), 195712  }
   0x9   : > { %1326 = vmatprep.subr.bf16.mxu0 (!%p388_p2), %v1450_v1  ;;  %1328 = vmatprep.mubr.msk.bf16.mxu0 (!%p388_p2), %vm1451_vm0, %v1450_v1  ;;  %v607_v39 = vsub.s32 (!%p388_p2), 0, %v606_v38  ;;  %s1460_s23 = smov (!%p388_p2), 8   ;;  %s1461_s28 = smov (!%p388_p2), 16   ;;  %vm1078_vm11 = vcmask (!%p388_p2), 261312  }
   0xa   : > { %1417 = vset.pattern.permute.xlu0 (!%p388_p2), %v1452_v9  ;;  %s1462_s29 = smov (!%p388_p2), 24  }
   0xb   : > { %1335 = vmatpush3.bf16.msra.mxu1 (!%p388_p2), %v1420_v3 }
   0xc   : > { %1327 = vmatpush3.bf16.msra.mxu0 (!%p388_p2), %v1421_v4  ;;  %1346 = vmatprep.subr.bf16.mxu1 (!%p388_p2), %v1450_v1 }
   0xd   : > { %s1710_s22 = smov (!%p438_p3, %s1266_s22), 1  ;;  %1340 = vmatprep.subr.bf16.mxu0 %v1450_v1 }
   0xe   : > { %s1559_s13 = sshll.u32 %s1710_s22, 3  ;;  %s452_s17 = scalar_lea.vmem %s1697_s3, %s1710_s22 }
   0xf   : > { %s445_s16 = scalar_lea.vmem %s1695_s1, %s1559_s13  ;;  %s441_s19 = scalar_lea.vmem %s1694_s0, %s1559_s13  ;;  %v597_v37 = vld [vmem:[%s452_s17] sm:$0x1] }
  0x10   : > { %v459_v5 = vld [vmem:[%s445_s16] sm:$0xff]  ;;  %s449_s30 = scalar_lea.vmem %s1696_s2, %s1559_s13  ;;  %vm598_vm4 = vcmp.gt.f32.partialorder %v597_v37, 0.0  ;;  %s1456_s22 = smov 96  }
  0x11   : > { %v528_v6 = vpack.c.bf16 %v459_v5, %v459_v5  ;;  %v1571_v7 = vld [vmem:[%s441_s19] sm:$0xff]  ;;  %v604_v40 = vsel %vm598_vm4, 1, %v1452_v9  ;;  %s1458_s19 = smov 72  }
  0x12   : > { %v460_v8 = vpack.c.bf16 %v1571_v7, %v1571_v7  ;;  %v595_v25 = vld [vmem:[%s449_s30] sm:$0xff]  ;;  %v608_v41 = vrot.slane %v604_v40, %v607_v39 }
  0x13   : > { %1337 = vmatmul.mubr.msk.bf16.vlgmr.msra.gmra.mrb[0].mxu1 %vm484_vm1, %v528_v6  ;;  %vm596_vm3 = vcmp.gt.f32.partialorder %v595_v25, 0.0 }
  0x14   : > { %1329 = vmatmul.mubr.msk.bf16.vlgmr.msra.gmra.mrb[0].mxu0 %vm484_vm1, %v460_v8  ;;  %1348 = vmatprep.mubr.msk.bf16.mxu1 %vm1451_vm0, %v1450_v1  ;;  %v599_v26 = vsel %vm596_vm3, 1, %v1452_v9  ;;  %vm609_vm5 = vcmp.eq.s32.totalorder %v608_v41, 1 }
  0x15   : > { %1342 = vmatprep.mubr.msk.bf16.mxu0 %vm1451_vm0, %v1450_v1 }
  0xe6   : > { %v589_v12 = vpop.f32.mrb[0].mxu1 }
  0xe7   : > { %v590_v13 = vadd.f32 %v1279_v10, %v589_v12  ;;  %v1338_v14 = vpop.f32.mrb[1].mxu1  ;;  %v522_v15 = vpop.f32.mrb[0].mxu0 }
  0xe8   : > { %v592_v16 = vpop.f32.mrb[2].mxu1  ;;  %v523_v17 = vadd.f32 %v1275_v11, %v522_v15  ;;  %v1330_v18 = vpop.f32.mrb[1].mxu0 }
  0xe9   : > { %v1588_v19 = vpack.c.bf16 %v590_v13, %v590_v13  ;;  %v1339_v20 = vpop.f32.mrb[3].mxu1  ;;  %v525_v21 = vpop.f32.mrb[2].mxu0 }
  0xea   : > { %v1331_v22 = vpop.f32.mrb[3].mxu0  ;;  %v611_v23 = vpack.c.bf16 %v523_v17, %v523_v17 }
  0xeb   : > { %846 = vrot.lane.b32.xlu1 %v1588_v19, %s1453_s26  ;;  %728 = vrot.lane.b32.xlu0 %v1588_v19, %s1454_s27  ;;  %v618_v24 = vsel %vm613_vm2, %v1588_v19, 0 }
  0xec   : > { %1341 = vmatpush3.bf16.xpose.msra.mxu0 %v618_v24 }
  0xed   : > { %1352 = vmatprep.subr.bf16.mxu0 %v1450_v1 }
  0xef   : > { %844 = vrot.lane.b32.xlu1 %v611_v23, %s1453_s26  ;;  %726 = vrot.lane.b32.xlu0 %v611_v23, %s1454_s27 }
  0xf3   : > { %962 = vrot.lane.b32.xlu1 %v611_v23, %s1455_s14  ;;  %964 = vrot.lane.b32.xlu0 %v1588_v19, %s1455_s14 }
  0xf4   : > { %1343 = vmatmul.mubr.msk.bf16.vlgmr.msra.gmra.mrb[4].mxu0 %vm613_vm2, %v611_v23 }
  0xf5   : > { %1354 = vmatprep.mubr.msk.bf16.mxu0 %vm1451_vm0, %v1450_v1 }
  0xf7   : > { %601 = vperm.xlu0 %1417, %v599_v26  }
 0x15d   : > { %v729_v27 = vpop.permute.xlu0 %728  ;;  %v847_v29 = vpop.permute.xlu1 %846 }
 0x15e   : > { %v734_v28 = vsel %vm613_vm2, %v729_v27, 0  ;;  %v852_v31 = vsel %vm613_vm2, %v847_v29, 0 }
 0x15f   : > { %1353 = vmatpush3.bf16.xpose.msra.mxu0 %v734_v28 }
 0x160   : > { %1364 = vmatprep.subr.bf16.mxu0 %v1450_v1 }
 0x161   : > { %v727_v30 = vpop.permute.xlu0 %726  ;;  %v845_v33 = vpop.permute.xlu1 %844 }
 0x165   : > { %v965_v32 = vpop.permute.xlu0 %964  ;;  %v963_v35 = vpop.permute.xlu1 %962 }
 0x166   : > { %1355 = vmatmul.mubr.msk.bf16.vlgmr.msra.gmra.mrb[8].mxu0 %vm613_vm2, %v727_v30  ;;  %v970_v34 = vsel %vm613_vm2, %v965_v32, 0 }
 0x167   : > { %1365 = vmatpush3.bf16.xpose.msra.mxu0 %v852_v31  ;;  %1366 = vmatprep.mubr.msk.bf16.mxu0 %vm1451_vm0, %v1450_v1 }
 0x168   : > { %1376 = vmatprep.subr.bf16.mxu0 %v1450_v1 }
 0x16e   : > { %1367 = vmatmul.mubr.msk.bf16.vlgmr.msra.gmra.mrb[12].mxu0 %vm613_vm2, %v845_v33 }
 0x16f   : > { %1377 = vmatpush3.bf16.xpose.msra.mxu0 %v970_v34  ;;  %1378 = vmatprep.mubr.msk.bf16.mxu0 %vm1451_vm0, %v1450_v1 }
 0x170   : > { %1388 = vmatprep.subr.bf16.mxu0 %v1450_v1 }
 0x176   : > { %1379 = vmatmul.mubr.msk.bf16.vlgmr.msra.gmra.mrb[16].mxu0 %vm613_vm2, %v963_v35  ;;  %v602_v42 = vpop.permute.xlu0 %601 }
 0x177   : > { %1392 = vmatprep.mubr.msk.bf16.mxu0 %vm1451_vm0, %v1450_v1  ;;  %vm603_vm6 = vcmp.eq.s32.totalorder %v602_v42, 1 }
 0x178   : > { %vm1624_vm7 = vmand %vm603_vm6, %vm609_vm5 }
 0x1c7   : > { %v654_v44 = vpop.f32.mrb[4].mxu0 }
 0x1c8   : > { %v660_v45 = vmul.f32 0.35355338, %v654_v44  ;;  %v1344_v46 = vpop.f32.mrb[5].mxu0 }
 0x1c9   : > { %v657_v47 = vpop.f32.mrb[6].mxu0 }
 0x1ca   : > { %v1345_v48 = vpop.f32.mrb[7].mxu0  ;;  %v661_v49 = vsel %vm1624_vm7, %v660_v45, -1000.0 }
 0x1cb   : > { %v662_v50 = vsel %vm613_vm2, %v661_v49, -inf }
 0x1cc   : > { %663 = vmax.xlane.f32.xlu1 %v662_v50 }
 0x239   : > { %v770_v51 = vpop.f32.mrb[8].mxu0 }
 0x23a   : > { %v776_v52 = vmul.f32 0.35355338, %v770_v51  ;;  %v1356_v53 = vpop.f32.mrb[9].mxu0 }
 0x23b   : > { %v773_v54 = vpop.f32.mrb[10].mxu0 }
 0x23c   : > { %v1357_v55 = vpop.f32.mrb[11].mxu0  ;;  %v777_v56 = vsel %vm1624_vm7, %v776_v52, -1000.0 }
 0x23d   : > { %v778_v57 = vsel %vm613_vm2, %v777_v56, -inf }
 0x23e   : > { %779 = vmax.xlane.f32.xlu0 %v778_v57 }
 0x241   : > { %v888_v58 = vpop.f32.mrb[12].mxu0 }
 0x242   : > { %v894_v59 = vmul.f32 0.35355338, %v888_v58  ;;  %v1368_v60 = vpop.f32.mrb[13].mxu0 }
 0x243   : > { %v891_v61 = vpop.f32.mrb[14].mxu0 }
 0x244   : > { %v1369_v62 = vpop.f32.mrb[15].mxu0  ;;  %v895_v63 = vsel %vm1624_vm7, %v894_v59, -1000.0 }
 0x245   : > { %v896_v0 = vsel %vm613_vm2, %v895_v63, -inf  ;;  %v1422_v62 = vld [vmem:[%s1702_s8] sm:$0xff]  }
 0x246   : > { %897 = vmax.xlane.f32.xlu1 %v896_v0  ;;  %1389 = vmatpush3.bf16.msra.mxu0 %v1422_v62 }
 0x247   : > { %1390 = vmatprep.subr.bf16.mxu0 %v1450_v1 }
 0x249   : > { %v1006_v2 = vpop.f32.mrb[16].mxu0 }
 0x24a   : > { %v1012_v3 = vmul.f32 0.35355338, %v1006_v2  ;;  %v1380_v4 = vpop.f32.mrb[17].mxu0 }
 0x24b   : > { %v1009_v5 = vpop.f32.mrb[18].mxu0 }
 0x24c   : > { %v1381_v6 = vpop.f32.mrb[19].mxu0  ;;  %v1013_v8 = vsel %vm1624_vm7, %v1012_v3, -1000.0 }
 0x24d   : > { %v1014_v9 = vsel %vm613_vm2, %v1013_v8, -inf }
 0x24e   : > { %1015 = vmax.xlane.f32.xlu0 %v1014_v9 }
 0x259   : > { %v664_v10 = vpop.xlane.xlu1 %663 }
 0x25a   : > { %v665_v11 = vsub.f32 %v661_v49, %v664_v10 }
 0x25c   : > { %v666_v12 = vmul.f32 1.442695, %v665_v11 }
 0x25e   : > { %1424 = vpow2.f32 %v666_v12 }
 0x268   : > { %v1425_v13 = vpop.eup %1424 }
 0x269   : > { %v668_v14 = vsel %vm613_vm2, %v1425_v13, 0.0 }
 0x26a   : > { %669 = vadd.xlane.f32.xlu1 %v668_v14  ;;  %v1291_v14 = vld [vmem:[%s1703_s9] ss:$0 sm:$0xff] }
 0x27b   : > { %675 = vrot.lane.b32.xlu1 %v1588_v19, %s1456_s22 }
 0x2cb   : > { %v780_v15 = vpop.xlane.xlu0 %779 }
 0x2cc   : > { %v781_v16 = vsub.f32 %v777_v56, %v780_v15 }
 0x2ce   : > { %v782_v17 = vmul.f32 1.442695, %v781_v16 }
 0x2d0   : > { %1426 = vpow2.f32 %v782_v17 }
 0x2d3   : > { %v898_v18 = vpop.xlane.xlu1 %897 }
 0x2d4   : > { %v899_v20 = vsub.f32 %v895_v63, %v898_v18  ;;  %v1423_v63 = vld [vmem:[%s1702_s8 + $0x8] sm:$0xff]  }
 0x2d5   : > { %1391 = vmatpush3.bf16.msra.mxu0 %v1423_v63 }
 0x2d6   : > { %v900_v21 = vmul.f32 1.442695, %v899_v20 }
 0x2d8   : > { %1428 = vpow2.f32 %v900_v21 }
 0x2da   : > { %v1427_v22 = vpop.eup %1426 }
 0x2db   : > { %v1016_v23 = vpop.xlane.xlu0 %1015  ;;  %v784_v24 = vsel %vm613_vm2, %v1427_v22, 0.0 }
 0x2dc   : > { %v1017_v25 = vsub.f32 %v1013_v8, %v1016_v23  ;;  %785 = vadd.xlane.f32.xlu0 %v784_v24 }
 0x2de   : > { %v1018_v26 = vmul.f32 1.442695, %v1017_v25 }
 0x2e0   : > { %1430 = vpow2.f32 %v1018_v26 }
 0x2e2   : > { %v1429_v27 = vpop.eup %1428 }
 0x2e3   : > { %v902_v28 = vsel %vm613_vm2, %v1429_v27, 0.0 }
 0x2e4   : > { %903 = vadd.xlane.f32.xlu1 %v902_v28 }
 0x2ea   : > { %v1431_v29 = vpop.eup %1430 }
 0x2eb   : > { %v1020_v30 = vsel %vm613_vm2, %v1431_v29, 0.0 }
 0x2ec   : > { %1021 = vadd.xlane.f32.xlu0 %v1020_v30 }
 0x2f5   : > { %908 = vrot.lane.b32.xlu1 %v1588_v19, %s1457_s18 }
 0x2f7   : > { %v670_v31 = vpop.xlane.xlu1 %669 }
 0x2f8   : > { %1432 = vrcp.f32 %v670_v31 }
 0x2f9   : > { %1026 = vrot.lane.b32.xlu1 %v1588_v19, %s1458_s19 }
 0x2fb   : > { %v676_v32 = vpop.permute.xlu1 %675 }
 0x2fc   : > { %v682_v33 = vsel %vm680_vm8, %v676_v32, 0 }
 0x2fd   : > { %1347 = vmatpush3.bf16.msra.mxu1 %v682_v33  ;;  %v1296_v33 = vld [vmem:[%s1705_s11] ss:$0 sm:$0xff] }
 0x2fe   : > { %1358 = vmatprep.subr.bf16.mxu1 %v1450_v1 }
 0x302   : > { %v1433_v34 = vpop.eup %1432  ;;  %790 = vrot.lane.b32.xlu0 %v1588_v19, %s1459_s20  ;;  %s456_s20 = scalar_lea.vmem %s1706_s12, %s1559_s13 }
 0x303   : > { %v672_v35 = vmul.f32 %v1433_v34, %v1425_v13 }
 0x305   : > { %v673_v36 = vpack.c.bf16 %v672_v35, %v672_v35 }
 0x307   : > { %1349 = vmatmul.mubr.msk.bf16.vlgmr.msra.gmra.mrb[4].mxu1 %vm613_vm2, %v673_v36 }
 0x308   : > { %1360 = vmatprep.mubr.msk.bf16.mxu1 %vm1451_vm0, %v1450_v1 }
 0x369   : > { %v786_v37 = vpop.xlane.xlu0 %785 }
 0x36a   : > { %1434 = vrcp.f32 %v786_v37 }
 0x371   : > { %v904_v38 = vpop.xlane.xlu1 %903 }
 0x372   : > { %1436 = vrcp.f32 %v904_v38 }
 0x374   : > { %v1435_v39 = vpop.eup %1434 }
 0x375   : > { %v788_v41 = vmul.f32 %v1435_v39, %v1427_v22  ;;  %v909_v44 = vpop.permute.xlu1 %908 }
 0x376   : > { %v914_v46 = vsel %vm680_vm8, %v909_v44, 0 }
 0x377   : > { %v789_v19 = vpack.c.bf16 %v788_v41, %v788_v41 }
 0x379   : > { %v1022_v40 = vpop.xlane.xlu0 %1021  ;;  %v1027_v48 = vpop.permute.xlu1 %1026 }
 0x37a   : > { %1438 = vrcp.f32 %v1022_v40  ;;  %v1032_v51 = vsel %vm680_vm8, %v1027_v48, 0 }
 0x37c   : > { %v1437_v45 = vpop.eup %1436 }
 0x37d   : > { %v791_v42 = vpop.permute.xlu0 %790  ;;  %v906_v47 = vmul.f32 %v1437_v45, %v1429_v27 }
 0x37e   : > { %v796_v43 = vsel %vm680_vm8, %v791_v42, 0 }
 0x37f   : > { %1359 = vmatpush3.bf16.msra.mxu1 %v796_v43  ;;  %v907_v49 = vpack.c.bf16 %v906_v47, %v906_v47 }
 0x380   : > { %1370 = vmatprep.subr.bf16.mxu1 %v1450_v1 }
 0x382   : > { %1361 = vmatmul.mubr.msk.bf16.vlgmr.msra.gmra.mrb[8].mxu1 %vm613_vm2, %v789_v19 }
 0x383   : > { %1371 = vmatpush3.bf16.msra.mxu1 %v914_v46  ;;  %1372 = vmatprep.mubr.msk.bf16.mxu1 %vm1451_vm0, %v1450_v1 }
 0x384   : > { %1382 = vmatprep.subr.bf16.mxu1 %v1450_v1  ;;  %v1439_v50 = vpop.eup %1438 }
 0x385   : > { %v1024_v52 = vmul.f32 %v1439_v50, %v1431_v29 }
 0x387   : > { %v1025_v53 = vpack.c.bf16 %v1024_v52, %v1024_v52 }
 0x38a   : > { %1373 = vmatmul.mubr.msk.bf16.vlgmr.msra.gmra.mrb[12].mxu1 %vm613_vm2, %v907_v49 }
 0x38b   : > { %1383 = vmatpush3.bf16.msra.mxu1 %v1032_v51  ;;  %1384 = vmatprep.mubr.msk.bf16.mxu1 %vm1451_vm0, %v1450_v1 }
 0x392   : > { %1385 = vmatmul.mubr.msk.bf16.vlgmr.msra.gmra.mrb[16].mxu1 %vm613_vm2, %v1025_v53 }
 0x3da   : > { %v718_v54 = vpop.f32.mrb[4].mxu1 }
 0x3db   : > { %724 = vst.msk [vmem:[#allocation2] sm:$0xff] %vm613_vm2, %v718_v54  ;;  %v1350_v55 = vpop.f32.mrb[5].mxu1 }
 0x3dc   : > { %v721_v56 = vpop.f32.mrb[6].mxu1 }
 0x3dd   : > { %v1351_v57 = vpop.f32.mrb[7].mxu1 }
 0x455   : > { %v832_v58 = vpop.f32.mrb[8].mxu1 }
 0x456   : > { %839 = vrot.lane.b32.xlu0 %v832_v58, %s1460_s23  ;;  %v1362_v59 = vpop.f32.mrb[9].mxu1 }
 0x457   : > { %v835_v60 = vpop.f32.mrb[10].mxu1 }
 0x458   : > { %v1363_v61 = vpop.f32.mrb[11].mxu1 }
 0x45d   : > { %v950_v0 = vpop.f32.mrb[12].mxu1 }
 0x45e   : > { %957 = vrot.lane.b32.xlu1 %v950_v0, %s1461_s28  ;;  %v1374_v2 = vpop.f32.mrb[13].mxu1 }
 0x45f   : > { %v953_v3 = vpop.f32.mrb[14].mxu1 }
 0x460   : > { %v1375_v4 = vpop.f32.mrb[15].mxu1 }
 0x465   : > { %v1068_v5 = vpop.f32.mrb[16].mxu1 }
 0x466   : > { %1075 = vrot.lane.b32.xlu0 %v1068_v5, %s1462_s29  ;;  %v1386_v6 = vpop.f32.mrb[17].mxu1 }
 0x467   : > { %v1071_v8 = vpop.f32.mrb[18].mxu1 }
 0x468   : > { %v1387_v9 = vpop.f32.mrb[19].mxu1 }
 0x4c8   : > { %v840_v10 = vpop.permute.xlu0 %839 }
 0x4c9   : > { %843 = vst.msk [vmem:[#allocation2] sm:$0xff] %vm842_vm9, %v840_v10 }
 0x4d0   : > { %v958_v11 = vpop.permute.xlu1 %957 }
 0x4d1   : > { %961 = vst.msk [vmem:[#allocation2] sm:$0xff] %vm960_vm10, %v958_v11 }
 0x4d8   : > { %v1076_v1 = vpop.permute.xlu0 %1075 }
 0x4d9   : > { %1079 = vst.msk [vmem:[#allocation2] sm:$0xff] %vm1078_vm11, %v1076_v1 }
 0x4e0   : > { %v1080_v12 = vld [vmem:[#allocation2] sm:$0xff] }
 0x4e1   : > { %v1081_v13 = vpack.c.bf16 %v1080_v12, %v1080_v12 }
 0x4e3   : > { %1393 = vmatmul.mubr.msk.bf16.vlgmr.msra.gmra.mrb[20].mxu0 %vm484_vm1, %v1081_v13 }
 0x5b6   : > { %v1142_v15 = vpop.f32.mrb[20].mxu0 }
 0x5b7   : > { %v1143_v16 = vadd.f32 %v1291_v14, %v1142_v15  ;;  %v1394_v17 = vpop.f32.mrb[21].mxu0 }
 0x5b8   : > { %v1145_v18 = vpop.f32.mrb[22].mxu0 }
 0x5b9   : > { %v1395_v20 = vpop.f32.mrb[23].mxu0  ;;  %v1148_v21 = vadd.f32 %v1143_v16, %v1571_v7  ;;  %v1295_v7 = vld [vmem:[%s1704_s10] ss:$0 sm:$0xff] }
 0x5bb   : > { %v1149_v22 = vsel %vm484_vm1, %v1148_v21, 0.0 }
 0x5bc   : > { %1150 = vadd.xlane.f32.xlu1 %v1149_v22 }
 0x649   : > { %v1151_v23 = vpop.xlane.xlu1 %1150 }
 0x64a   : > { %v1153_v24 = vmul.f32 0.03125, %v1151_v23 }
 0x64c   : > { %v1154_v25 = vsub.f32 %v1148_v21, %v1153_v24 }
 0x64e   : > { %v1155_v26 = vmul.f32 %v1154_v25, %v1154_v25 }
 0x650   : > { %v1156_v27 = vsel %vm484_vm1, %v1155_v26, 0.0 }
 0x651   : > { %1157 = vadd.xlane.f32.xlu0 %v1156_v27 }
 0x6de   : > { %v1158_v28 = vpop.xlane.xlu0 %1157 }
 0x6df   : > { %v1159_v29 = vmul.f32 0.03125, %v1158_v28 }
 0x6e1   : > { %v1160_v30 = vadd.f32 1e-10, %v1159_v29 }
 0x6e3   : > { %1440 = vrsqrt.f32 %v1160_v30 }
 0x6ed   : > { %v1441_v31 = vpop.eup %1440 }
 0x6ee   : > { %v1162_v32 = vmul.f32 %v1441_v31, %v1154_v25 }
 0x6f0   : > { %v1170_v34 = vmul.f32 %v1295_v7, %v1162_v32 }
 0x6f2   : > { %v1178_v35 = vadd.f32 %v1296_v33, %v1170_v34 }
 0x6f4   : > { %1179 = vst.msk [vmem:[%s456_s20] sm:$0xff] %vm484_vm1, %v1178_v35 }
 0x6f5 PF: > { %s22_s21 = sadd.s32 1, %s1448_s21  }
 0x6f6   : > { %p19_p4 = scmp.ge.s32.totalorder %s22_s21, 4  }
 0x6f8   :  { %21 = sbr.rel (!%p19_p4) target bundleno = 1 (0x1), region = 107 }

// kernel: transformer_forward.16
= control target key start
LH: loop header
LB: loop body
LE: loop exit
PB: predicated region body
PF: predicated region fallthrough
CT: control target
= control target key end

     0   :  { %s1534_s21 = smov 0   ;;  %s1700_s0 = inlined_call_operand.vmem [shape: f32[2,8,32], index: 0, kind: input, shape index: {}]   ;;  %s1701_s1 = inlined_call_operand.vmem [shape: f32[2,8,32], index: 1, kind: input, shape index: {}]   ;;  %s1702_s2 = inlined_call_operand.vmem [shape: f32[2,8,1], index: 2, kind: input, shape index: {}]   ;;  %s1703_s3 = inlined_call_operand.vmem [shape: f32[2,1,8], index: 3, kind: input, shape index: {}]   ;;  %s1704_s4 = inlined_call_operand.vmem [shape: bf16[32,32], index: 4, kind: input, shape index: {}]   ;;  %s1705_s5 = inlined_call_operand.vmem [shape: f32[1,32], index: 5, kind: input, shape index: {}]   ;;  %s1706_s6 = inlined_call_operand.vmem [shape: bf16[32,64], index: 6, kind: input, shape index: {}]   ;;  %s1707_s7 = inlined_call_operand.vmem [shape: f32[1,64], index: 7, kind: input, shape index: {}]   ;;  %s1708_s8 = inlined_call_operand.vmem [shape: bf16[32,32], index: 8, kind: input, shape index: {}]   ;;  %s1709_s9 = inlined_call_operand.vmem [shape: f32[1,32], index: 9, kind: input, shape index: {}]   ;;  %s1710_s10 = inlined_call_operand.vmem [shape: f32[1,32], index: 10, kind: input, shape index: {}]   ;;  %s1711_s11 = inlined_call_operand.vmem [shape: f32[1,32], index: 11, kind: input, shape index: {}]   ;;  %s1712_s12 = inlined_call_operand.vmem [shape: f32[2,8,32], index: 12, kind: output, shape index: {}]  }
   0x1 LB: > { %s1272_s22 = sadd.s32 4294967295, %s1454_s21   ;;  %p1276_p0 = scmp.ge.s32.totalorder %s1454_s21, 1  ;;  %s1454_s21 = sphi %s1534_s21, %s22_s21  }
   0x2   : > { %p387_p1 = scmp.lt.s32.totalorder %s1454_s21, 3 }
   0x4   : > { %p388_p2 = pnand %p1276_p0, %p387_p1 }
   0x5   : > { %v1424_v0 = vld [vmem:[%s1706_s6] sm:$0xff] (!%p388_p2)   ;;  %v1456_v1 = vmov (!%p388_p2), 0.0   ;;  %v1426_v3 = vld [vmem:[%s1706_s6 + $0x8] sm:$0xff] (!%p388_p2)   ;;  %vm1457_vm0 = vmmov (!%p388_p2), 0   ;;  %p438_p3 = scmp.lt.s32.totalorder (!%p388_p2), %s1272_s22, 1  ;;  %vm484_vm1 = vcmask (!%p388_p2), 261120   ;;  %v605_v36 = vlaneseq (!%p388_p2) }
   0x6   : > { %391 = sbr.rel (%p388_p2) target bundleno = 1781 (0x6f5), region = 68  ;;  %1338 = vmatprep.subr.bf16.mxu1 (!%p388_p2), %v1456_v1  ;;  %1330 = vmatprep.subr.bf16.mxu0 (!%p388_p2), %v1456_v1  ;;  %v1425_v2 = vld [vmem:[%s1704_s4] sm:$0xff] (!%p388_p2)   ;;  %v1427_v4 = vld [vmem:[%s1704_s4 + $0x8] sm:$0xff] (!%p388_p2)   ;;  %v1458_v9 = vmov (!%p388_p2), 0   ;;  %vm619_vm2 = vcmask (!%p388_p2), 64512   ;;  %s1459_s26 = smov (!%p388_p2), 112  }
   0x7   : > { %1339 = vmatpush3.bf16.msra.mxu1 (!%p388_p2), %v1424_v0  ;;  %1342 = vmatprep.mubr.msk.bf16.mxu1 (!%p388_p2), %vm1457_vm0, %v1456_v1  ;;  %v1285_v10 = vld [vmem:[%s1707_s7] ss:$0 sm:$0xff] (!%p388_p2)  ;;  %s1460_s27 = smov (!%p388_p2), 120   ;;  %s1461_s14 = smov (!%p388_p2), 104   ;;  %v606_v38 = vshrl.u32 (!%p388_p2), %v605_v36, 7  ;;  %v614_v43 = vand.u32 (!%p388_p2), 127, %v605_v36 }
   0x8   : > { %1340 = vmatprep.subr.bf16.mxu1 (!%p388_p2), %v1456_v1  ;;  %1331 = vmatpush3.bf16.msra.mxu0 (!%p388_p2), %v1425_v2  ;;  %v1281_v11 = vld [vmem:[%s1705_s5] ss:$0 sm:$0xff] (!%p388_p2)  ;;  %s1463_s18 = smov (!%p388_p2), 80   ;;  %vm686_vm10 = vcmask (!%p388_p2), 1043456   ;;  %s1465_s20 = smov (!%p388_p2), 88   ;;  %vm848_vm11 = vcmask (!%p388_p2), 130112  }
   0x9   : > { %1332 = vmatprep.subr.bf16.mxu0 (!%p388_p2), %v1456_v1  ;;  %1334 = vmatprep.mubr.msk.bf16.mxu0 (!%p388_p2), %vm1457_vm0, %v1456_v1  ;;  %v607_v39 = vsub.s32 (!%p388_p2), 0, %v606_v38  ;;  %vm615_vm7 = vcmp.le.s32.totalorder (!%p388_p2), %v614_v43, %v606_v38  ;;  %s1466_s23 = smov (!%p388_p2), 8   ;;  %s1467_s28 = smov (!%p388_p2), 16   ;;  %vm966_vm12 = vcmask (!%p388_p2), 195712   ;;  %vm1084_vm13 = vcmask (!%p388_p2), 261312  }
   0xa   : > { %1423 = vset.pattern.permute.xlu0 (!%p388_p2), %v1458_v9  ;;  %s1468_s29 = smov (!%p388_p2), 24  }
   0xb   : > { %1341 = vmatpush3.bf16.msra.mxu1 (!%p388_p2), %v1426_v3 }
   0xc   : > { %1333 = vmatpush3.bf16.msra.mxu0 (!%p388_p2), %v1427_v4  ;;  %1352 = vmatprep.subr.bf16.mxu1 (!%p388_p2), %v1456_v1 }
   0xd   : > { %s1716_s22 = smov (!%p438_p3, %s1272_s22), 1  ;;  %1346 = vmatprep.subr.bf16.mxu0 %v1456_v1 }
   0xe   : > { %s1565_s13 = sshll.u32 %s1716_s22, 3  ;;  %s452_s17 = scalar_lea.vmem %s1703_s3, %s1716_s22 }
   0xf   : > { %s445_s16 = scalar_lea.vmem %s1701_s1, %s1565_s13  ;;  %s441_s19 = scalar_lea.vmem %s1700_s0, %s1565_s13  ;;  %v597_v37 = vld [vmem:[%s452_s17] sm:$0x1] }
  0x10   : > { %v459_v5 = vld [vmem:[%s445_s16] sm:$0xff]  ;;  %s449_s30 = scalar_lea.vmem %s1702_s2, %s1565_s13  ;;  %vm598_vm4 = vcmp.gt.f32.partialorder %v597_v37, 0.0  ;;  %s1462_s22 = smov 96  }
  0x11   : > { %v528_v6 = vpack.c.bf16 %v459_v5, %v459_v5  ;;  %v1577_v7 = vld [vmem:[%s441_s19] sm:$0xff]  ;;  %v604_v40 = vsel %vm598_vm4, 1, %v1458_v9  ;;  %s1464_s19 = smov 72  }
  0x12   : > { %v460_v8 = vpack.c.bf16 %v1577_v7, %v1577_v7  ;;  %v595_v25 = vld [vmem:[%s449_s30] sm:$0xff]  ;;  %v608_v41 = vrot.slane %v604_v40, %v607_v39 }
  0x13   : > { %1343 = vmatmul.mubr.msk.bf16.vlgmr.msra.gmra.mrb[0].mxu1 %vm484_vm1, %v528_v6  ;;  %vm596_vm3 = vcmp.gt.f32.partialorder %v595_v25, 0.0 }
  0x14   : > { %1335 = vmatmul.mubr.msk.bf16.vlgmr.msra.gmra.mrb[0].mxu0 %vm484_vm1, %v460_v8  ;;  %1354 = vmatprep.mubr.msk.bf16.mxu1 %vm1457_vm0, %v1456_v1  ;;  %v599_v26 = vsel %vm596_vm3, 1, %v1458_v9  ;;  %vm609_vm5 = vcmp.eq.s32.totalorder %v608_v41, 1 }
  0x15   : > { %1348 = vmatprep.mubr.msk.bf16.mxu0 %vm1457_vm0, %v1456_v1 }
  0xe6   : > { %v589_v12 = vpop.f32.mrb[0].mxu1 }
  0xe7   : > { %v590_v13 = vadd.f32 %v1285_v10, %v589_v12  ;;  %v1344_v14 = vpop.f32.mrb[1].mxu1  ;;  %v522_v15 = vpop.f32.mrb[0].mxu0 }
  0xe8   : > { %v592_v16 = vpop.f32.mrb[2].mxu1  ;;  %v523_v17 = vadd.f32 %v1281_v11, %v522_v15  ;;  %v1336_v18 = vpop.f32.mrb[1].mxu0 }
  0xe9   : > { %v1594_v19 = vpack.c.bf16 %v590_v13, %v590_v13  ;;  %v1345_v20 = vpop.f32.mrb[3].mxu1  ;;  %v525_v21 = vpop.f32.mrb[2].mxu0 }
  0xea   : > { %v1337_v22 = vpop.f32.mrb[3].mxu0  ;;  %v617_v23 = vpack.c.bf16 %v523_v17, %v523_v17 }
  0xeb   : > { %852 = vrot.lane.b32.xlu1 %v1594_v19, %s1459_s26  ;;  %734 = vrot.lane.b32.xlu0 %v1594_v19, %s1460_s27  ;;  %v624_v24 = vsel %vm619_vm2, %v1594_v19, 0 }
  0xec   : > { %1347 = vmatpush3.bf16.xpose.msra.mxu0 %v624_v24 }
  0xed   : > { %1358 = vmatprep.subr.bf16.mxu0 %v1456_v1 }
  0xef   : > { %850 = vrot.lane.b32.xlu1 %v617_v23, %s1459_s26  ;;  %732 = vrot.lane.b32.xlu0 %v617_v23, %s1460_s27 }
  0xf3   : > { %968 = vrot.lane.b32.xlu1 %v617_v23, %s1461_s14  ;;  %970 = vrot.lane.b32.xlu0 %v1594_v19, %s1461_s14 }
  0xf4   : > { %1349 = vmatmul.mubr.msk.bf16.vlgmr.msra.gmra.mrb[4].mxu0 %vm619_vm2, %v617_v23 }
  0xf5   : > { %1360 = vmatprep.mubr.msk.bf16.mxu0 %vm1457_vm0, %v1456_v1 }
  0xf7   : > { %601 = vperm.xlu0 %1423, %v599_v26  }
 0x15d   : > { %v735_v27 = vpop.permute.xlu0 %734  ;;  %v853_v29 = vpop.permute.xlu1 %852 }
 0x15e   : > { %v740_v28 = vsel %vm619_vm2, %v735_v27, 0  ;;  %v858_v31 = vsel %vm619_vm2, %v853_v29, 0 }
 0x15f   : > { %1359 = vmatpush3.bf16.xpose.msra.mxu0 %v740_v28 }
 0x160   : > { %1370 = vmatprep.subr.bf16.mxu0 %v1456_v1 }
 0x161   : > { %v733_v30 = vpop.permute.xlu0 %732  ;;  %v851_v33 = vpop.permute.xlu1 %850 }
 0x165   : > { %v971_v32 = vpop.permute.xlu0 %970  ;;  %v969_v35 = vpop.permute.xlu1 %968 }
 0x166   : > { %1361 = vmatmul.mubr.msk.bf16.vlgmr.msra.gmra.mrb[8].mxu0 %vm619_vm2, %v733_v30  ;;  %v976_v34 = vsel %vm619_vm2, %v971_v32, 0 }
 0x167   : > { %1371 = vmatpush3.bf16.xpose.msra.mxu0 %v858_v31  ;;  %1372 = vmatprep.mubr.msk.bf16.mxu0 %vm1457_vm0, %v1456_v1 }
 0x168   : > { %1382 = vmatprep.subr.bf16.mxu0 %v1456_v1 }
 0x16e   : > { %1373 = vmatmul.mubr.msk.bf16.vlgmr.msra.gmra.mrb[12].mxu0 %vm619_vm2, %v851_v33 }
 0x16f   : > { %1383 = vmatpush3.bf16.xpose.msra.mxu0 %v976_v34  ;;  %1384 = vmatprep.mubr.msk.bf16.mxu0 %vm1457_vm0, %v1456_v1 }
 0x170   : > { %1394 = vmatprep.subr.bf16.mxu0 %v1456_v1 }
 0x176   : > { %1385 = vmatmul.mubr.msk.bf16.vlgmr.msra.gmra.mrb[16].mxu0 %vm619_vm2, %v969_v35  ;;  %v602_v42 = vpop.permute.xlu0 %601 }
 0x177   : > { %1398 = vmatprep.mubr.msk.bf16.mxu0 %vm1457_vm0, %v1456_v1  ;;  %vm603_vm6 = vcmp.eq.s32.totalorder %v602_v42, 1 }
 0x178   : > { %vm610_vm8 = vmand %vm603_vm6, %vm609_vm5 }
 0x179   : > { %vm1630_vm9 = vmand %vm610_vm8, %vm615_vm7 }
 0x1c7   : > { %v660_v45 = vpop.f32.mrb[4].mxu0 }
 0x1c8   : > { %v666_v46 = vmul.f32 0.35355338, %v660_v45  ;;  %v1350_v47 = vpop.f32.mrb[5].mxu0 }
 0x1c9   : > { %v663_v48 = vpop.f32.mrb[6].mxu0 }
 0x1ca   : > { %v1351_v49 = vpop.f32.mrb[7].mxu0  ;;  %v667_v50 = vsel %vm1630_vm9, %v666_v46, -1000.0 }
 0x1cb   : > { %v668_v51 = vsel %vm619_vm2, %v667_v50, -inf }
 0x1cc   : > { %669 = vmax.xlane.f32.xlu1 %v668_v51 }
 0x239   : > { %v776_v52 = vpop.f32.mrb[8].mxu0 }
 0x23a   : > { %v782_v53 = vmul.f32 0.35355338, %v776_v52  ;;  %v1362_v54 = vpop.f32.mrb[9].mxu0 }
 0x23b   : > { %v779_v55 = vpop.f32.mrb[10].mxu0 }
 0x23c   : > { %v1363_v56 = vpop.f32.mrb[11].mxu0  ;;  %v783_v57 = vsel %vm1630_vm9, %v782_v53, -1000.0 }
 0x23d   : > { %v784_v58 = vsel %vm619_vm2, %v783_v57, -inf }
 0x23e   : > { %785 = vmax.xlane.f32.xlu0 %v784_v58 }
 0x241   : > { %v894_v59 = vpop.f32.mrb[12].mxu0 }
 0x242   : > { %v900_v60 = vmul.f32 0.35355338, %v894_v59  ;;  %v1374_v61 = vpop.f32.mrb[13].mxu0 }
 0x243   : > { %v897_v62 = vpop.f32.mrb[14].mxu0 }
 0x244   : > { %v1375_v63 = vpop.f32.mrb[15].mxu0  ;;  %v901_v0 = vsel %vm1630_vm9, %v900_v60, -1000.0 }
 0x245   : > { %v902_v2 = vsel %vm619_vm2, %v901_v0, -inf  ;;  %v1428_v63 = vld [vmem:[%s1708_s8] sm:$0xff]  }
 0x246   : > { %903 = vmax.xlane.f32.xlu1 %v902_v2  ;;  %1395 = vmatpush3.bf16.msra.mxu0 %v1428_v63 }
 0x247   : > { %1396 = vmatprep.subr.bf16.mxu0 %v1456_v1 }
 0x249   : > { %v1012_v3 = vpop.f32.mrb[16].mxu0 }
 0x24a   : > { %v1018_v4 = vmul.f32 0.35355338, %v1012_v3  ;;  %v1386_v5 = vpop.f32.mrb[17].mxu0 }
 0x24b   : > { %v1015_v6 = vpop.f32.mrb[18].mxu0 }
 0x24c   : > { %v1387_v8 = vpop.f32.mrb[19].mxu0  ;;  %v1019_v9 = vsel %vm1630_vm9, %v1018_v4, -1000.0 }
 0x24d   : > { %v1020_v10 = vsel %vm619_vm2, %v1019_v9, -inf }
 0x24e   : > { %1021 = vmax.xlane.f32.xlu0 %v1020_v10 }
 0x259   : > { %v670_v11 = vpop.xlane.xlu1 %669 }
 0x25a   : > { %v671_v12 = vsub.f32 %v667_v50, %v670_v11 }
 0x25c   : > { %v672_v13 = vmul.f32 1.442695, %v671_v12 }
 0x25e   : > { %1430 = vpow2.f32 %v672_v13 }
 0x268   : > { %v1431_v14 = vpop.eup %1430 }
 0x269   : > { %v674_v15 = vsel %vm619_vm2, %v1431_v14, 0.0 }
 0x26a   : > { %675 = vadd.xlane.f32.xlu1 %v674_v15  ;;  %v1297_v15 = vld [vmem:[%s1709_s9] ss:$0 sm:$0xff] }
 0x27b   : > { %681 = vrot.lane.b32.xlu1 %v1594_v19, %s1462_s22 }
 0x2cb   : > { %v786_v16 = vpop.xlane.xlu0 %785 }
 0x2cc   : > { %v787_v17 = vsub.f32 %v783_v57, %v786_v16 }
 0x2ce   : > { %v788_v18 = vmul.f32 1.442695, %v787_v17 }
 0x2d0   : > { %1432 = vpow2.f32 %v788_v18 }
 0x2d3   : > { %v904_v20 = vpop.xlane.xlu1 %903 }
 0x2d4   : > { %v905_v21 = vsub.f32 %v901_v0, %v904_v20  ;;  %v1429_v0 = vld [vmem:[%s1708_s8 + $0x8] sm:$0xff]  }
 0x2d5   : > { %1397 = vmatpush3.bf16.msra.mxu0 %v1429_v0 }
 0x2d6   : > { %v906_v22 = vmul.f32 1.442695, %v905_v21 }
 0x2d8   : > { %1434 = vpow2.f32 %v906_v22 }
 0x2da   : > { %v1433_v23 = vpop.eup %1432 }
 0x2db   : > { %v1022_v24 = vpop.xlane.xlu0 %1021  ;;  %v790_v25 = vsel %vm619_vm2, %v1433_v23, 0.0 }
 0x2dc   : > { %v1023_v26 = vsub.f32 %v1019_v9, %v1022_v24  ;;  %791 = vadd.xlane.f32.xlu0 %v790_v25 }
 0x2de   : > { %v1024_v27 = vmul.f32 1.442695, %v1023_v26 }
 0x2e0   : > { %1436 = vpow2.f32 %v1024_v27 }
 0x2e2   : > { %v1435_v28 = vpop.eup %1434 }
 0x2e3   : > { %v908_v29 = vsel %vm619_vm2, %v1435_v28, 0.0 }
 0x2e4   : > { %909 = vadd.xlane.f32.xlu1 %v908_v29 }
 0x2ea   : > { %v1437_v30 = vpop.eup %1436 }
 0x2eb   : > { %v1026_v31 = vsel %vm619_vm2, %v1437_v30, 0.0 }
 0x2ec   : > { %1027 = vadd.xlane.f32.xlu0 %v1026_v31 }
 0x2f5   : > { %914 = vrot.lane.b32.xlu1 %v1594_v19, %s1463_s18 }
 0x2f7   : > { %v676_v32 = vpop.xlane.xlu1 %675 }
 0x2f8   : > { %1438 = vrcp.f32 %v676_v32 }
 0x2f9   : > { %1032 = vrot.lane.b32.xlu1 %v1594_v19, %s1464_s19 }
 0x2fb   : > { %v682_v33 = vpop.permute.xlu1 %681 }
 0x2fc   : > { %v688_v34 = vsel %vm686_vm10, %v682_v33, 0 }
 0x2fd   : > { %1353 = vmatpush3.bf16.msra.mxu1 %v688_v34  ;;  %v1302_v34 = vld [vmem:[%s1711_s11] ss:$0 sm:$0xff] }
 0x2fe   : > { %1364 = vmatprep.subr.bf16.mxu1 %v1456_v1 }
 0x302   : > { %v1439_v35 = vpop.eup %1438  ;;  %796 = vrot.lane.b32.xlu0 %v1594_v19, %s1465_s20  ;;  %s456_s20 = scalar_lea.vmem %s1712_s12, %s1565_s13 }
 0x303   : > { %v678_v36 = vmul.f32 %v1439_v35, %v1431_v14 }
 0x305   : > { %v679_v37 = vpack.c.bf16 %v678_v36, %v678_v36 }
 0x307   : > { %1355 = vmatmul.mubr.msk.bf16.vlgmr.msra.gmra.mrb[4].mxu1 %vm619_vm2, %v679_v37 }
 0x308   : > { %1366 = vmatprep.mubr.msk.bf16.mxu1 %vm1457_vm0, %v1456_v1 }
 0x369   : > { %v792_v38 = vpop.xlane.xlu0 %791 }
 0x36a   : > { %1440 = vrcp.f32 %v792_v38 }
 0x371   : > { %v910_v39 = vpop.xlane.xlu1 %909 }
 0x372   : > { %1442 = vrcp.f32 %v910_v39 }
 0x374   : > { %v1441_v40 = vpop.eup %1440 }
 0x375   : > { %v794_v42 = vmul.f32 %v1441_v40, %v1433_v23  ;;  %v915_v45 = vpop.permute.xlu1 %914 }
 0x376   : > { %v920_v47 = vsel %vm686_vm10, %v915_v45, 0 }
 0x377   : > { %v795_v19 = vpack.c.bf16 %v794_v42, %v794_v42 }
 0x379   : > { %v1028_v41 = vpop.xlane.xlu0 %1027  ;;  %v1033_v49 = vpop.permute.xlu1 %1032 }
 0x37a   : > { %1444 = vrcp.f32 %v1028_v41  ;;  %v1038_v52 = vsel %vm686_vm10, %v1033_v49, 0 }
 0x37c   : > { %v1443_v46 = vpop.eup %1442 }
 0x37d   : > { %v797_v43 = vpop.permute.xlu0 %796  ;;  %v912_v48 = vmul.f32 %v1443_v46, %v1435_v28 }
 0x37e   : > { %v802_v44 = vsel %vm686_vm10, %v797_v43, 0 }
 0x37f   : > { %1365 = vmatpush3.bf16.msra.mxu1 %v802_v44  ;;  %v913_v50 = vpack.c.bf16 %v912_v48, %v912_v48 }
 0x380   : > { %1376 = vmatprep.subr.bf16.mxu1 %v1456_v1 }
 0x382   : > { %1367 = vmatmul.mubr.msk.bf16.vlgmr.msra.gmra.mrb[8].mxu1 %vm619_vm2, %v795_v19 }
 0x383   : > { %1377 = vmatpush3.bf16.msra.mxu1 %v920_v47  ;;  %1378 = vmatprep.mubr.msk.bf16.mxu1 %vm1457_vm0, %v1456_v1 }
 0x384   : > { %1388 = vmatprep.subr.bf16.mxu1 %v1456_v1  ;;  %v1445_v51 = vpop.eup %1444 }
 0x385   : > { %v1030_v53 = vmul.f32 %v1445_v51, %v1437_v30 }
 0x387   : > { %v1031_v54 = vpack.c.bf16 %v1030_v53, %v1030_v53 }
 0x38a   : > { %1379 = vmatmul.mubr.msk.bf16.vlgmr.msra.gmra.mrb[12].mxu1 %vm619_vm2, %v913_v50 }
 0x38b   : > { %1389 = vmatpush3.bf16.msra.mxu1 %v1038_v52  ;;  %1390 = vmatprep.mubr.msk.bf16.mxu1 %vm1457_vm0, %v1456_v1 }
 0x392   : > { %1391 = vmatmul.mubr.msk.bf16.vlgmr.msra.gmra.mrb[16].mxu1 %vm619_vm2, %v1031_v54 }
 0x3da   : > { %v724_v55 = vpop.f32.mrb[4].mxu1 }
 0x3db   : > { %730 = vst.msk [vmem:[#allocation2] sm:$0xff] %vm619_vm2, %v724_v55  ;;  %v1356_v56 = vpop.f32.mrb[5].mxu1 }
 0x3dc   : > { %v727_v57 = vpop.f32.mrb[6].mxu1 }
 0x3dd   : > { %v1357_v58 = vpop.f32.mrb[7].mxu1 }
 0x455   : > { %v838_v59 = vpop.f32.mrb[8].mxu1 }
 0x456   : > { %845 = vrot.lane.b32.xlu0 %v838_v59, %s1466_s23  ;;  %v1368_v60 = vpop.f32.mrb[9].mxu1 }
 0x457   : > { %v841_v61 = vpop.f32.mrb[10].mxu1 }
 0x458   : > { %v1369_v62 = vpop.f32.mrb[11].mxu1 }
 0x45d   : > { %v956_v2 = vpop.f32.mrb[12].mxu1 }
 0x45e   : > { %963 = vrot.lane.b32.xlu1 %v956_v2, %s1467_s28  ;;  %v1380_v3 = vpop.f32.mrb[13].mxu1 }
 0x45f   : > { %v959_v4 = vpop.f32.mrb[14].mxu1 }
 0x460   : > { %v1381_v5 = vpop.f32.mrb[15].mxu1 }
 0x465   : > { %v1074_v6 = vpop.f32.mrb[16].mxu1 }
 0x466   : > { %1081 = vrot.lane.b32.xlu0 %v1074_v6, %s1468_s29  ;;  %v1392_v8 = vpop.f32.mrb[17].mxu1 }
 0x467   : > { %v1077_v9 = vpop.f32.mrb[18].mxu1 }
 0x468   : > { %v1393_v10 = vpop.f32.mrb[19].mxu1 }
 0x4c8   : > { %v846_v11 = vpop.permute.xlu0 %845 }
 0x4c9   : > { %849 = vst.msk [vmem:[#allocation2] sm:$0xff] %vm848_vm11, %v846_v11 }
 0x4d0   : > { %v964_v12 = vpop.permute.xlu1 %963 }
 0x4d1   : > { %967 = vst.msk [vmem:[#allocation2] sm:$0xff] %vm966_vm12, %v964_v12 }
 0x4d8   : > { %v1082_v1 = vpop.permute.xlu0 %1081 }
 0x4d9   : > { %1085 = vst.msk [vmem:[#allocation2] sm:$0xff] %vm1084_vm13, %v1082_v1 }
 0x4e0   : > { %v1086_v13 = vld [vmem:[#allocation2] sm:$0xff] }
 0x4e1   : > { %v1087_v14 = vpack.c.bf16 %v1086_v13, %v1086_v13 }
 0x4e3   : > { %1399 = vmatmul.mubr.msk.bf16.vlgmr.msra.gmra.mrb[20].mxu0 %vm484_vm1, %v1087_v14 }
 0x5b6   : > { %v1148_v16 = vpop.f32.mrb[20].mxu0 }
 0x5b7   : > { %v1149_v17 = vadd.f32 %v1297_v15, %v1148_v16  ;;  %v1400_v18 = vpop.f32.mrb[21].mxu0 }
 0x5b8   : > { %v1151_v20 = vpop.f32.mrb[22].mxu0 }
 0x5b9   : > { %v1401_v21 = vpop.f32.mrb[23].mxu0  ;;  %v1154_v22 = vadd.f32 %v1149_v17, %v1577_v7  ;;  %v1301_v7 = vld [vmem:[%s1710_s10] ss:$0 sm:$0xff] }
 0x5bb   : > { %v1155_v23 = vsel %vm484_vm1, %v1154_v22, 0.0 }
 0x5bc   : > { %1156 = vadd.xlane.f32.xlu1 %v1155_v23 }
 0x649   : > { %v1157_v24 = vpop.xlane.xlu1 %1156 }
 0x64a   : > { %v1159_v25 = vmul.f32 0.03125, %v1157_v24 }
 0x64c   : > { %v1160_v26 = vsub.f32 %v1154_v22, %v1159_v25 }
 0x64e   : > { %v1161_v27 = vmul.f32 %v1160_v26, %v1160_v26 }
 0x650   : > { %v1162_v28 = vsel %vm484_vm1, %v1161_v27, 0.0 }
 0x651   : > { %1163 = vadd.xlane.f32.xlu0 %v1162_v28 }
 0x6de   : > { %v1164_v29 = vpop.xlane.xlu0 %1163 }
 0x6df   : > { %v1165_v30 = vmul.f32 0.03125, %v1164_v29 }
 0x6e1   : > { %v1166_v31 = vadd.f32 1e-10, %v1165_v30 }
 0x6e3   : > { %1446 = vrsqrt.f32 %v1166_v31 }
 0x6ed   : > { %v1447_v32 = vpop.eup %1446 }
 0x6ee   : > { %v1168_v33 = vmul.f32 %v1447_v32, %v1160_v26 }
 0x6f0   : > { %v1176_v35 = vmul.f32 %v1301_v7, %v1168_v33 }
 0x6f2   : > { %v1184_v36 = vadd.f32 %v1302_v34, %v1176_v35 }
 0x6f4   : > { %1185 = vst.msk [vmem:[%s456_s20] sm:$0xff] %vm484_vm1, %v1184_v36 }
 0x6f5 PF: > { %s22_s21 = sadd.s32 1, %s1454_s21  }
 0x6f6   : > { %p19_p4 = scmp.ge.s32.totalorder %s22_s21, 4  }
 0x6f8   :  { %21 = sbr.rel (!%p19_p4) target bundleno = 1 (0x1), region = 107 }

</bundles_post_ra>
